<compile_context>
chip_gen: v7x
topology: tpu7x:2x2x1
jax: 0.10.0
libtpu: 0.0.40
codegen_flags: <defaults>
</compile_context>

<pallas_src>
import functools

import jax
import jax.numpy as jnp
from jax.experimental import pallas as pl
from jax.experimental.pallas import tpu as pltpu

LEAK = 0.2
DROP_P = 0.3
H1, H2, H3 = 1024, 512, 256
NPAD = 128  # lane-dense padded width of the final (N=1) layer


def _round_up(n, m):
    return ((n + m - 1) // m) * m


def disc_kernel(x_ref, m1_ref, m2_ref, m3_ref,
                w1_ref, b1_ref,
                w2_ref, b2_ref,
                w3_ref, b3_ref,
                w4_ref, b4_ref,
                out_ref):
    # Layer 1: bf16 matmul, f32 accumulate; fused leaky-ReLU + dropout scale.
    h = jnp.dot(x_ref[...], w1_ref[...],
                preferred_element_type=jnp.float32) + b1_ref[...]
    h = jnp.where(h > 0, h, LEAK * h) * m1_ref[...]

    # Layer 2
    h = jnp.dot(h.astype(jnp.bfloat16), w2_ref[...],
                preferred_element_type=jnp.float32) + b2_ref[...]
    h = jnp.where(h > 0, h, LEAK * h) * m2_ref[...]

    # Layer 3
    h = jnp.dot(h.astype(jnp.bfloat16), w3_ref[...],
                preferred_element_type=jnp.float32) + b3_ref[...]
    h = jnp.where(h > 0, h, LEAK * h) * m3_ref[...]

    # Layer 4 (padded to 128 output lanes; only column 0 is meaningful)
    logit = jnp.dot(h.astype(jnp.bfloat16), w4_ref[...],
                    preferred_element_type=jnp.float32) + b4_ref[...]
    out_ref[...] = jax.nn.sigmoid(logit)


def discriminator_forward(x, params, key, *, block_m=256):
    """x: (B, input_dim) float32 -> (B, 1) float32 (dropout active)."""
    B, D = x.shape
    w1, b1, w2, b2, w3, b3, w4, b4 = params

    # --- batch tiling (pad rows to a multiple of the tile) -------------------
    TM = block_m if B >= block_m else _round_up(B, 8)
    Bp = _round_up(B, TM)
    grid = (Bp // TM,)

    x_p = jnp.zeros((Bp, D), jnp.float32).at[:B].set(x).astype(jnp.bfloat16)

    # --- dropout keep-scales, generated on the host (no in-kernel PRNG) ------
    k1, k2, k3 = jax.random.split(key, 3)
    inv_keep = jnp.float32(1.0 / (1.0 - DROP_P))
    m1 = jnp.where(jax.random.uniform(k1, (Bp, H1)) >= DROP_P, inv_keep, 0.0)
    m2 = jnp.where(jax.random.uniform(k2, (Bp, H2)) >= DROP_P, inv_keep, 0.0)
    m3 = jnp.where(jax.random.uniform(k3, (Bp, H3)) >= DROP_P, inv_keep, 0.0)

    # --- bf16 weights, f32 biases; pad the N=1 final layer to 128 lanes ------
    w1b, w2b, w3b = (w.astype(jnp.bfloat16) for w in (w1, w2, w3))
    w4p = jnp.zeros((H3, NPAD), jnp.float32).at[:, :1].set(w4).astype(jnp.bfloat16)
    b4p = jnp.zeros((1, NPAD), jnp.float32).at[:, :1].set(b4)

    def row(shape):   # per-batch-tile blocks
        return pl.BlockSpec(shape, lambda i: (i, 0))

    def full(shape):  # resident (weights / biases), DMA'd once
        return pl.BlockSpec(shape, lambda i: (0, 0))

    flops = 2 * Bp * (D * H1 + H1 * H2 + H2 * H3 + H3 * NPAD)
    bytes_accessed = (
        x_p.size * 2 + (m1.size + m2.size + m3.size) * 4
        + (w1b.size + w2b.size + w3b.size + w4p.size) * 2
        + (b1.size + b2.size + b3.size + b4p.size) * 4
        + Bp * NPAD * 4)

    out = pl.pallas_call(
        disc_kernel,
        out_shape=jax.ShapeDtypeStruct((Bp, NPAD), jnp.float32),
        grid=grid,
        in_specs=[
            row((TM, D)),
            row((TM, H1)), row((TM, H2)), row((TM, H3)),
            full((D, H1)), full((1, H1)),
            full((H1, H2)), full((1, H2)),
            full((H2, H3)), full((1, H3)),
            full((H3, NPAD)), full((1, NPAD)),
        ],
        out_specs=row((TM, NPAD)),
        compiler_params=pltpu.CompilerParams(
            dimension_semantics=("parallel",)),
        cost_estimate=pl.CostEstimate(
            flops=flops, transcendentals=Bp * NPAD,
            bytes_accessed=bytes_accessed),
    )(x_p, m1, m2, m3, w1b, b1, w2b, b2, w3b, b3, w4p, b4p)

    return out[:B, :1]


def init_params(input_dim, key):
    """PyTorch-Linear-like init: U(-1/sqrt(fan_in), 1/sqrt(fan_in))."""
    dims = [(input_dim, H1), (H1, H2), (H2, H3), (H3, 1)]
    params = []
    for fan_in, fan_out in dims:
        key, kw, kb = jax.random.split(key, 3)
        bound = 1.0 / (fan_in ** 0.5)
        w = jax.random.uniform(kw, (fan_in, fan_out), jnp.float32, -bound, bound)
        b = jax.random.uniform(kb, (1, fan_out), jnp.float32, -bound, bound)
        params += [w, b]
    return params


if __name__ == "__main__":
    key = jax.random.PRNGKey(0)
    k_x, k_p, k_drop = jax.random.split(key, 3)

    B, INPUT_DIM = 8, 64
    x = jax.random.normal(k_x, (B, INPUT_DIM), dtype=jnp.float32)
    params = init_params(INPUT_DIM, k_p)

    out = discriminator_forward(x, params, k_drop)
    out = jax.block_until_ready(out)

    assert out.shape == (B, 1)
    assert bool(jnp.all(jnp.isfinite(out)))
    assert bool(jnp.all((out >= 0.0) & (out <= 1.0)))
    print("KERNEL_OK")
</pallas_src>

<mosaic_0001>
module attributes {stable_mosaic.version = 11 : i64} {
  func.func @disc_kernel(%arg0: i32, %arg1: memref<8x64xbf16, #tpu.memory_space<vmem>>, %arg2: memref<8x1024xf32, #tpu.memory_space<vmem>>, %arg3: memref<8x512xf32, #tpu.memory_space<vmem>>, %arg4: memref<8x256xf32, #tpu.memory_space<vmem>>, %arg5: memref<64x1024xbf16, #tpu.memory_space<vmem>>, %arg6: memref<1x1024xf32, #tpu.memory_space<vmem>>, %arg7: memref<1024x512xbf16, #tpu.memory_space<vmem>>, %arg8: memref<1x512xf32, #tpu.memory_space<vmem>>, %arg9: memref<512x256xbf16, #tpu.memory_space<vmem>>, %arg10: memref<1x256xf32, #tpu.memory_space<vmem>>, %arg11: memref<256x128xbf16, #tpu.memory_space<vmem>>, %arg12: memref<1x128xf32, #tpu.memory_space<vmem>>, %arg13: memref<8x128xf32, #tpu.memory_space<vmem>>) attributes {dimension_semantics = [#tpu.dimension_semantics<parallel>], iteration_bounds = array<i64: 1>, scalar_prefetch = 0 : i64, scratch_operands = 0 : i64, tpu.core_type = #tpu.core_type<tc>, window_params = [{transform_indices = @transform_0, window_bounds = array<i64: 8, 64>}, {transform_indices = @transform_1, window_bounds = array<i64: 8, 1024>}, {transform_indices = @transform_2, window_bounds = array<i64: 8, 512>}, {transform_indices = @transform_3, window_bounds = array<i64: 8, 256>}, {pipeline_mode = #tpu.pipeline_mode<synchronous>, transform_indices = @transform_4, window_bounds = array<i64: 64, 1024>}, {pipeline_mode = #tpu.pipeline_mode<synchronous>, transform_indices = @transform_5, window_bounds = array<i64: 1, 1024>}, {pipeline_mode = #tpu.pipeline_mode<synchronous>, transform_indices = @transform_6, window_bounds = array<i64: 1024, 512>}, {pipeline_mode = #tpu.pipeline_mode<synchronous>, transform_indices = @transform_7, window_bounds = array<i64: 1, 512>}, {pipeline_mode = #tpu.pipeline_mode<synchronous>, transform_indices = @transform_8, window_bounds = array<i64: 512, 256>}, {pipeline_mode = #tpu.pipeline_mode<synchronous>, transform_indices = @transform_9, window_bounds = array<i64: 1, 256>}, {pipeline_mode = #tpu.pipeline_mode<synchronous>, transform_indices = @transform_10, window_bounds = array<i64: 256, 128>}, {pipeline_mode = #tpu.pipeline_mode<synchronous>, transform_indices = @transform_11, window_bounds = array<i64: 1, 128>}, {transform_indices = @transform_12, window_bounds = array<i64: 8, 128>}]} {
    %c0 = arith.constant 0 : index
    %c0_0 = arith.constant 0 : index
    %0 = vector.load %arg1[%c0, %c0_0] : memref<8x64xbf16, #tpu.memory_space<vmem>>, vector<8x64xbf16>
    %c0_1 = arith.constant 0 : index
    %c0_2 = arith.constant 0 : index
    %1 = vector.load %arg5[%c0_1, %c0_2] : memref<64x1024xbf16, #tpu.memory_space<vmem>>, vector<64x1024xbf16>
    %cst = arith.constant dense<0.000000e+00> : vector<8x1024xf32>
    %2 = tpu.matmul %0, %1, %cst {dimension_numbers = #tpu.dot_dimension_numbers<[1], [0], [0], [1], [0, 0, 1, 1], [], []>} : vector<8x64xbf16>, vector<64x1024xbf16>, vector<8x1024xf32> -> vector<8x1024xf32>
    %c0_3 = arith.constant 0 : index
    %c0_4 = arith.constant 0 : index
    %3 = vector.load %arg6[%c0_3, %c0_4] : memref<1x1024xf32, #tpu.memory_space<vmem>>, vector<1x1024xf32>
    %4 = vector.broadcast %3 : vector<1x1024xf32> to vector<8x1024xf32>
    %5 = arith.addf %2, %4 : vector<8x1024xf32>
    %cst_5 = arith.constant 0.000000e+00 : f32
    %6 = vector.broadcast %cst_5 : f32 to vector<8x1024xf32>
    %7 = arith.cmpf ogt, %5, %6 : vector<8x1024xf32>
    %cst_6 = arith.constant 2.000000e-01 : f32
    %8 = vector.broadcast %cst_6 : f32 to vector<8x1024xf32>
    %9 = arith.mulf %8, %5 : vector<8x1024xf32>
    %10 = arith.select %7, %5, %9 : vector<8x1024xi1>, vector<8x1024xf32>
    %c0_7 = arith.constant 0 : index
    %c0_8 = arith.constant 0 : index
    %11 = vector.load %arg2[%c0_7, %c0_8] : memref<8x1024xf32, #tpu.memory_space<vmem>>, vector<8x1024xf32>
    %12 = arith.mulf %10, %11 : vector<8x1024xf32>
    %13 = arith.truncf %12 : vector<8x1024xf32> to vector<8x1024xbf16>
    %c0_9 = arith.constant 0 : index
    %c0_10 = arith.constant 0 : index
    %14 = vector.load %arg7[%c0_9, %c0_10] : memref<1024x512xbf16, #tpu.memory_space<vmem>>, vector<1024x512xbf16>
    %cst_11 = arith.constant dense<0.000000e+00> : vector<8x512xf32>
    %15 = tpu.matmul %13, %14, %cst_11 {dimension_numbers = #tpu.dot_dimension_numbers<[1], [0], [0], [1], [0, 0, 1, 1], [], []>} : vector<8x1024xbf16>, vector<1024x512xbf16>, vector<8x512xf32> -> vector<8x512xf32>
    %c0_12 = arith.constant 0 : index
    %c0_13 = arith.constant 0 : index
    %16 = vector.load %arg8[%c0_12, %c0_13] : memref<1x512xf32, #tpu.memory_space<vmem>>, vector<1x512xf32>
    %17 = vector.broadcast %16 : vector<1x512xf32> to vector<8x512xf32>
    %18 = arith.addf %15, %17 : vector<8x512xf32>
    %cst_14 = arith.constant 0.000000e+00 : f32
    %19 = vector.broadcast %cst_14 : f32 to vector<8x512xf32>
    %20 = arith.cmpf ogt, %18, %19 : vector<8x512xf32>
    %cst_15 = arith.constant 2.000000e-01 : f32
    %21 = vector.broadcast %cst_15 : f32 to vector<8x512xf32>
    %22 = arith.mulf %21, %18 : vector<8x512xf32>
    %23 = arith.select %20, %18, %22 : vector<8x512xi1>, vector<8x512xf32>
    %c0_16 = arith.constant 0 : index
    %c0_17 = arith.constant 0 : index
    %24 = vector.load %arg3[%c0_16, %c0_17] : memref<8x512xf32, #tpu.memory_space<vmem>>, vector<8x512xf32>
    %25 = arith.mulf %23, %24 : vector<8x512xf32>
    %26 = arith.truncf %25 : vector<8x512xf32> to vector<8x512xbf16>
    %c0_18 = arith.constant 0 : index
    %c0_19 = arith.constant 0 : index
    %27 = vector.load %arg9[%c0_18, %c0_19] : memref<512x256xbf16, #tpu.memory_space<vmem>>, vector<512x256xbf16>
    %cst_20 = arith.constant dense<0.000000e+00> : vector<8x256xf32>
    %28 = tpu.matmul %26, %27, %cst_20 {dimension_numbers = #tpu.dot_dimension_numbers<[1], [0], [0], [1], [0, 0, 1, 1], [], []>} : vector<8x512xbf16>, vector<512x256xbf16>, vector<8x256xf32> -> vector<8x256xf32>
    %c0_21 = arith.constant 0 : index
    %c0_22 = arith.constant 0 : index
    %29 = vector.load %arg10[%c0_21, %c0_22] : memref<1x256xf32, #tpu.memory_space<vmem>>, vector<1x256xf32>
    %30 = vector.broadcast %29 : vector<1x256xf32> to vector<8x256xf32>
    %31 = arith.addf %28, %30 : vector<8x256xf32>
    %cst_23 = arith.constant 0.000000e+00 : f32
    %32 = vector.broadcast %cst_23 : f32 to vector<8x256xf32>
    %33 = arith.cmpf ogt, %31, %32 : vector<8x256xf32>
    %cst_24 = arith.constant 2.000000e-01 : f32
    %34 = vector.broadcast %cst_24 : f32 to vector<8x256xf32>
    %35 = arith.mulf %34, %31 : vector<8x256xf32>
    %36 = arith.select %33, %31, %35 : vector<8x256xi1>, vector<8x256xf32>
    %c0_25 = arith.constant 0 : index
    %c0_26 = arith.constant 0 : index
    %37 = vector.load %arg4[%c0_25, %c0_26] : memref<8x256xf32, #tpu.memory_space<vmem>>, vector<8x256xf32>
    %38 = arith.mulf %36, %37 : vector<8x256xf32>
    %39 = arith.truncf %38 : vector<8x256xf32> to vector<8x256xbf16>
    %c0_27 = arith.constant 0 : index
    %c0_28 = arith.constant 0 : index
    %40 = vector.load %arg11[%c0_27, %c0_28] : memref<256x128xbf16, #tpu.memory_space<vmem>>, vector<256x128xbf16>
    %cst_29 = arith.constant dense<0.000000e+00> : vector<8x128xf32>
    %41 = tpu.matmul %39, %40, %cst_29 {dimension_numbers = #tpu.dot_dimension_numbers<[1], [0], [0], [1], [0, 0, 1, 1], [], []>} : vector<8x256xbf16>, vector<256x128xbf16>, vector<8x128xf32> -> vector<8x128xf32>
    %c0_30 = arith.constant 0 : index
    %c0_31 = arith.constant 0 : index
    %42 = vector.load %arg12[%c0_30, %c0_31] : memref<1x128xf32, #tpu.memory_space<vmem>>, vector<1x128xf32>
    %43 = vector.broadcast %42 : vector<1x128xf32> to vector<8x128xf32>
    %44 = arith.addf %41, %43 : vector<8x128xf32>
    %45 = arith.negf %44 : vector<8x128xf32>
    %46 = math.exp %45 : vector<8x128xf32>
    %cst_32 = arith.constant 1.000000e+00 : f32
    %47 = vector.broadcast %cst_32 : f32 to vector<8x128xf32>
    %48 = arith.addf %47, %46 : vector<8x128xf32>
    %49 = arith.divf %47, %48 : vector<8x128xf32>
    %c0_33 = arith.constant 0 : index
    %c0_34 = arith.constant 0 : index
    %50 = vector.load %arg13[%c0_33, %c0_34] : memref<8x128xf32, #tpu.memory_space<vmem>>, vector<8x128xf32>
    tpu.vector_store %arg13[%c0_33, %c0_34], %49 {strides = array<i32>} : memref<8x128xf32, #tpu.memory_space<vmem>>, vector<8x128xf32>,
    return
  }
  func.func @transform_0(%arg0: i32) -> (i32, i32) {
    %c0_i32 = arith.constant 0 : i32
    %c0_i32_0 = arith.constant 0 : i32
    return %arg0, %c0_i32 : i32, i32
  }
  func.func @transform_1(%arg0: i32) -> (i32, i32) {
    %c0_i32 = arith.constant 0 : i32
    %c0_i32_0 = arith.constant 0 : i32
    return %arg0, %c0_i32 : i32, i32
  }
  func.func @transform_2(%arg0: i32) -> (i32, i32) {
    %c0_i32 = arith.constant 0 : i32
    %c0_i32_0 = arith.constant 0 : i32
    return %arg0, %c0_i32 : i32, i32
  }
  func.func @transform_3(%arg0: i32) -> (i32, i32) {
    %c0_i32 = arith.constant 0 : i32
    %c0_i32_0 = arith.constant 0 : i32
    return %arg0, %c0_i32 : i32, i32
  }
  func.func @transform_4(%arg0: i32) -> (i32, i32) {
    %c0_i32 = arith.constant 0 : i32
    %c0_i32_0 = arith.constant 0 : i32
    %c0_i32_1 = arith.constant 0 : i32
    return %c0_i32, %c0_i32_0 : i32, i32
  }
  func.func @transform_5(%arg0: i32) -> (i32, i32) {
    %c0_i32 = arith.constant 0 : i32
    %c0_i32_0 = arith.constant 0 : i32
    %c0_i32_1 = arith.constant 0 : i32
    return %c0_i32, %c0_i32_0 : i32, i32
  }
  func.func @transform_6(%arg0: i32) -> (i32, i32) {
    %c0_i32 = arith.constant 0 : i32
    %c0_i32_0 = arith.constant 0 : i32
    %c0_i32_1 = arith.constant 0 : i32
    return %c0_i32, %c0_i32_0 : i32, i32
  }
  func.func @transform_7(%arg0: i32) -> (i32, i32) {
    %c0_i32 = arith.constant 0 : i32
    %c0_i32_0 = arith.constant 0 : i32
    %c0_i32_1 = arith.constant 0 : i32
    return %c0_i32, %c0_i32_0 : i32, i32
  }
  func.func @transform_8(%arg0: i32) -> (i32, i32) {
    %c0_i32 = arith.constant 0 : i32
    %c0_i32_0 = arith.constant 0 : i32
    %c0_i32_1 = arith.constant 0 : i32
    return %c0_i32, %c0_i32_0 : i32, i32
  }
  func.func @transform_9(%arg0: i32) -> (i32, i32) {
    %c0_i32 = arith.constant 0 : i32
    %c0_i32_0 = arith.constant 0 : i32
    %c0_i32_1 = arith.constant 0 : i32
    return %c0_i32, %c0_i32_0 : i32, i32
  }
  func.func @transform_10(%arg0: i32) -> (i32, i32) {
    %c0_i32 = arith.constant 0 : i32
    %c0_i32_0 = arith.constant 0 : i32
    %c0_i32_1 = arith.constant 0 : i32
    return %c0_i32, %c0_i32_0 : i32, i32
  }
  func.func @transform_11(%arg0: i32) -> (i32, i32) {
    %c0_i32 = arith.constant 0 : i32
    %c0_i32_0 = arith.constant 0 : i32
    %c0_i32_1 = arith.constant 0 : i32
    return %c0_i32, %c0_i32_0 : i32, i32
  }
  func.func @transform_12(%arg0: i32) -> (i32, i32) {
    %c0_i32 = arith.constant 0 : i32
    %c0_i32_0 = arith.constant 0 : i32
    return %arg0, %c0_i32 : i32, i32
  }
}

</mosaic_0001>

<bundles_post_ra>
// kernel: tpu_custom_call.1
= control target key start
LH: loop header
LB: loop body
LE: loop exit
PB: predicated region body
PF: predicated region fallthrough
CT: control target
= control target key end

     0   :  { %17 = vsyncpa [#allocation3], 0  ;;  %s4656_s0 = inlined_call_operand.hbm [shape: bf16[8,64], index: 0, kind: input, shape index: {}]   ;;  %s4657_s1 = inlined_call_operand.hbm [shape: f32[8,1024], index: 1, kind: input, shape index: {}]   ;;  %s4658_s2 = inlined_call_operand.hbm [shape: f32[8,512], index: 2, kind: input, shape index: {}]   ;;  %s4659_s3 = inlined_call_operand.hbm [shape: f32[8,256], index: 3, kind: input, shape index: {}]   ;;  %s4660_s4 = inlined_call_operand.hbm [shape: bf16[64,1024], index: 4, kind: input, shape index: {}]   ;;  %s4661_s5 = inlined_call_operand.vmem [shape: f32[1,1024], index: 5, kind: input, shape index: {}]   ;;  %s4662_s6 = inlined_call_operand.hbm [shape: bf16[1024,512], index: 6, kind: input, shape index: {}]   ;;  %s4663_s7 = inlined_call_operand.vmem [shape: f32[1,512], index: 7, kind: input, shape index: {}]   ;;  %s4664_s8 = inlined_call_operand.hbm [shape: bf16[512,256], index: 8, kind: input, shape index: {}]   ;;  %s4665_s9 = inlined_call_operand.vmem [shape: f32[1,256], index: 9, kind: input, shape index: {}]   ;;  %s4666_s10 = inlined_call_operand.hbm [shape: bf16[256,128], index: 10, kind: input, shape index: {}]   ;;  %s4667_s11 = inlined_call_operand.vmem [shape: f32[1,128], index: 11, kind: input, shape index: {}]   ;;  %s4668_s12 = inlined_call_operand.hbm [shape: f32[8,128], index: 12, kind: output, shape index: {}]  }
   0x1   :  { %18 = vsyncpa [#allocation6], 0 }
   0x2   :  { %19 = vsyncpa [#allocation9], 0 }
   0x3   :  { %20 = vsyncpa [#allocation12], 0 }
   0x4   :  { %21 = vsyncpa [#allocation15], 0 }
   0x5   :  { %22 = vsyncpa [#allocation4], 0  ;;  %s4352_s21 = smov [#allocation5]   ;;  %s4353_s23 = smov [#allocation8]  }
   0x6   :  { %s39_s22 = sshll.u32 %s4352_s21, 4  ;;  %s59_s24 = sshll.u32 %s4353_s23, 4  ;;  %s40_s22 = int_to_ptr.vmem [resolvable:$true] %s39_s22  ;;  %s60_s24 = int_to_ptr.vmem [resolvable:$true] %s59_s24 }
   0x7   :  { %s4142_s27 = scalar_lea.hbm %s4657_s1, 1024 }
   0x8   :  { %p4143_p0 = scmp.ne.s32.totalorder %s4657_s1, %s4142_s27  ;;  %p4146_p1 = scmp.lt.u32.totalorder %s4142_s27, %s4657_s1 }
   0xa   :  { %p4148_p2 = pnand %p4146_p1, %p4143_p0 }
   0xc   :  { %4151 = shalt.err (!%p4148_p2)
}
   0xd   :  { %s4152_s14 = scalar_lea.vmem %s40_s22, 1024  ;;  %p4157_p4 = scmp.lt.s32.totalorder %s40_s22, %s40_s22 }
   0xe   :  { %p4153_p3 = scmp.ne.s32.totalorder %s40_s22, %s4152_s14  ;;  %p4158_p5 = scmp.lt.s32.totalorder %s4152_s14, %s4152_s14 }
  0x10   :  { %p4159_p6 = por %p4158_p5, %p4157_p4 }
  0x12   :  { %p4160_p7 = pnand %p4159_p6, %p4153_p3 }
  0x14   :  { %4163 = shalt.err (!%p4160_p7)
}
  0x15   :  { %42 = dma.hbm_to_vmem [thread:$0]  %s4657_s1, 1024, %s40_s22, [#allocation6]  }
  0x16   :  { %s4164_s19 = scalar_lea.hbm %s4659_s3, 256 }
  0x17   :  { %p4165_p8 = scmp.ne.s32.totalorder %s4659_s3, %s4164_s19  ;;  %p4168_p9 = scmp.lt.u32.totalorder %s4164_s19, %s4659_s3 }
  0x19   :  { %p4170_p10 = pnand %p4168_p9, %p4165_p8 }
  0x1b   :  { %4173 = shalt.err (!%p4170_p10)
}
  0x1c   :  { %s4174_s26 = scalar_lea.vmem %s60_s24, 256  ;;  %p4179_p12 = scmp.lt.s32.totalorder %s60_s24, %s60_s24 }
  0x1d   :  { %p4175_p11 = scmp.ne.s32.totalorder %s60_s24, %s4174_s26  ;;  %p4180_p13 = scmp.lt.s32.totalorder %s4174_s26, %s4174_s26 }
  0x1f   :  { %p4181_p0 = por %p4180_p13, %p4179_p12 }
  0x21   :  { %p4182_p1 = pnand %p4181_p0, %p4175_p11 }
  0x23   :  { %4185 = shalt.err (!%p4182_p1)
}
  0x24   :  { %62 = dma.hbm_to_vmem [thread:$0]  %s4659_s3, 256, %s60_s24, [#allocation9]  }
  0x25   :  { %s4354_s27 = smov [#allocation11]   ;;  %s4186_s13 = scalar_lea.hbm %s4662_s6, 32768 }
  0x26   :  { %s82_s28 = sshll.u32 %s4354_s27, 4  ;;  %p4187_p2 = scmp.ne.s32.totalorder %s4662_s6, %s4186_s13  ;;  %s83_s28 = int_to_ptr.vmem [resolvable:$true] %s82_s28 }
  0x27   :  { %p4190_p3 = scmp.lt.u32.totalorder %s4186_s13, %s4662_s6 }
  0x29   :  { %p4192_p4 = pnand %p4190_p3, %p4187_p2 }
  0x2b   :  { %4195 = shalt.err (!%p4192_p4)
}
  0x2c   :  { %s4196_s18 = scalar_lea.vmem %s83_s28, 32768  ;;  %p4201_p6 = scmp.lt.s32.totalorder %s83_s28, %s83_s28 }
  0x2d   :  { %p4197_p5 = scmp.ne.s32.totalorder %s83_s28, %s4196_s18  ;;  %p4202_p7 = scmp.lt.s32.totalorder %s4196_s18, %s4196_s18 }
  0x2f   :  { %p4203_p8 = por %p4202_p7, %p4201_p6 }
  0x31   :  { %p4204_p9 = pnand %p4203_p8, %p4197_p5 }
  0x33   :  { %4207 = shalt.err (!%p4204_p9)
}
  0x34   :  { %s4355_s3 = smov 256   ;;  %s4356_s24 = smov 16  }
  0x35   :  { %88 = dma.hbm_to_vmem [thread:$0]  %s4662_s6, 32768, %s83_s28, [#allocation12], %s4355_s3, %s4355_s3, %s4356_s24  }
  0x36   :  { %s4357_s21 = smov [#allocation2]   ;;  %s4358_s25 = smov [#allocation7]  }
  0x37   :  { %s29_s23 = sshll.u32 %s4357_s21, 4  ;;  %s49_s26 = sshll.u32 %s4358_s25, 4  ;;  %s30_s23 = int_to_ptr.vmem [resolvable:$true] %s29_s23  ;;  %s50_s26 = int_to_ptr.vmem [resolvable:$true] %s49_s26 }
  0x38   :  { %s4208_s27 = scalar_lea.hbm %s4656_s0, 64 }
  0x39   :  { %p4209_p10 = scmp.ne.s32.totalorder %s4656_s0, %s4208_s27  ;;  %p4212_p11 = scmp.lt.u32.totalorder %s4208_s27, %s4656_s0 }
  0x3b   :  { %p4214_p12 = pnand %p4212_p11, %p4209_p10 }
  0x3d   :  { %4217 = shalt.err (!%p4214_p12)
}
  0x3e   :  { %s4218_s6 = scalar_lea.vmem %s30_s23, 64  ;;  %p4223_p0 = scmp.lt.s32.totalorder %s30_s23, %s30_s23 }
  0x3f   :  { %p4219_p13 = scmp.ne.s32.totalorder %s30_s23, %s4218_s6  ;;  %p4224_p1 = scmp.lt.s32.totalorder %s4218_s6, %s4218_s6 }
  0x41   :  { %p4225_p2 = por %p4224_p1, %p4223_p0 }
  0x43   :  { %p4226_p3 = pnand %p4225_p2, %p4219_p13 }
  0x45   :  { %4229 = shalt.err (!%p4226_p3)
}
  0x46   :  { %32 = dma.hbm_to_vmem [thread:$0]  %s4656_s0, 64, %s30_s23, [#allocation3]  }
  0x47   :  { %s4230_s18 = scalar_lea.hbm %s4658_s2, 512 }
  0x48   :  { %p4231_p4 = scmp.ne.s32.totalorder %s4658_s2, %s4230_s18  ;;  %p4234_p5 = scmp.lt.u32.totalorder %s4230_s18, %s4658_s2 }
  0x4a   :  { %p4236_p6 = pnand %p4234_p5, %p4231_p4 }
  0x4c   :  { %4239 = shalt.err (!%p4236_p6)
}
  0x4d   :  { %s4240_s21 = scalar_lea.vmem %s50_s26, 512  ;;  %p4245_p8 = scmp.lt.s32.totalorder %s50_s26, %s50_s26 }
  0x4e   :  { %p4241_p7 = scmp.ne.s32.totalorder %s50_s26, %s4240_s21  ;;  %p4246_p9 = scmp.lt.s32.totalorder %s4240_s21, %s4240_s21 }
  0x50   :  { %p4247_p10 = por %p4246_p9, %p4245_p8 }
  0x52   :  { %p4248_p11 = pnand %p4247_p10, %p4241_p7 }
  0x54   :  { %4251 = shalt.err (!%p4248_p11)
}
  0x55   :  { %52 = dma.hbm_to_vmem [thread:$0]  %s4658_s2, 512, %s50_s26, [#allocation6]  }
  0x56   :  { %s4359_s25 = smov [#allocation10]   ;;  %s4252_s29 = scalar_lea.hbm %s4660_s4, 4096 }
  0x57   :  { %s68_s1 = sshll.u32 %s4359_s25, 4  ;;  %p4253_p12 = scmp.ne.s32.totalorder %s4660_s4, %s4252_s29  ;;  %s69_s1 = int_to_ptr.vmem [resolvable:$true] %s68_s1 }
  0x58   :  { %p4256_p13 = scmp.lt.u32.totalorder %s4252_s29, %s4660_s4 }
  0x5a   :  { %p4258_p0 = pnand %p4256_p13, %p4253_p12 }
  0x5c   :  { %4261 = shalt.err (!%p4258_p0)
}
  0x5d   :  { %s4262_s28 = scalar_lea.vmem %s69_s1, 4096  ;;  %p4267_p2 = scmp.lt.s32.totalorder %s69_s1, %s69_s1 }
  0x5e   :  { %p4263_p1 = scmp.ne.s32.totalorder %s69_s1, %s4262_s28  ;;  %p4268_p3 = scmp.lt.s32.totalorder %s4262_s28, %s4262_s28 }
  0x60   :  { %p4269_p4 = por %p4268_p3, %p4267_p2 }
  0x62   :  { %p4270_p5 = pnand %p4269_p4, %p4263_p1 }
  0x64   :  { %4273 = shalt.err (!%p4270_p5)
}
  0x65   :  { %s4360_s2 = smov 512   ;;  %s4361_s26 = smov 32  }
  0x66   :  { %74 = dma.hbm_to_vmem [thread:$0]  %s4660_s4, 4096, %s69_s1, [#allocation9], %s4360_s2, %s4360_s2, %s4361_s26  }
  0x67   :  { %s4362_s17 = smov [#allocation13]   ;;  %s4274_s19 = scalar_lea.hbm %s4664_s8, 8192 }
  0x68   :  { %s96_s18 = sshll.u32 %s4362_s17, 4  ;;  %p4275_p6 = scmp.ne.s32.totalorder %s4664_s8, %s4274_s19  ;;  %s97_s18 = int_to_ptr.vmem [resolvable:$true] %s96_s18 }
  0x69   :  { %p4278_p7 = scmp.lt.u32.totalorder %s4274_s19, %s4664_s8 }
  0x6b   :  { %p4280_p8 = pnand %p4278_p7, %p4275_p6 }
  0x6d   :  { %4283 = shalt.err (!%p4280_p8)
}
  0x6e   :  { %s4284_s25 = scalar_lea.vmem %s97_s18, 8192  ;;  %p4289_p10 = scmp.lt.s32.totalorder %s97_s18, %s97_s18 }
  0x6f   :  { %p4285_p9 = scmp.ne.s32.totalorder %s97_s18, %s4284_s25  ;;  %p4290_p11 = scmp.lt.s32.totalorder %s4284_s25, %s4284_s25 }
  0x71   :  { %p4291_p12 = por %p4290_p11, %p4289_p10 }
  0x73   :  { %p4292_p13 = pnand %p4291_p12, %p4285_p9 }
  0x75   :  { %4295 = shalt.err (!%p4292_p13)
}
  0x76   :  { %s4363_s4 = smov 128   ;;  %s4364_s1 = smov 8  }
  0x77   :  { %102 = dma.hbm_to_vmem [thread:$0]  %s4664_s8, 8192, %s97_s18, [#allocation12], %s4363_s4, %s4363_s4, %s4364_s1  }
  0x78   :  { %s4365_s29 = smov [#allocation14]   ;;  %s4296_s6 = scalar_lea.hbm %s4666_s10, 2048 }
  0x79   :  { %s110_s30 = sshll.u32 %s4365_s29, 4  ;;  %p4297_p0 = scmp.ne.s32.totalorder %s4666_s10, %s4296_s6  ;;  %s111_s30 = int_to_ptr.vmem [resolvable:$true] %s110_s30 }
  0x7a   :  { %p4300_p1 = scmp.lt.u32.totalorder %s4296_s6, %s4666_s10 }
  0x7c   :  { %p4302_p2 = pnand %p4300_p1, %p4297_p0 }
  0x7e   :  { %4305 = shalt.err (!%p4302_p2)
}
  0x7f   :  { %s4306_s16 = scalar_lea.vmem %s111_s30, 2048  ;;  %p4311_p4 = scmp.lt.s32.totalorder %s111_s30, %s111_s30 }
  0x80   :  { %p4307_p3 = scmp.ne.s32.totalorder %s111_s30, %s4306_s16  ;;  %p4312_p5 = scmp.lt.s32.totalorder %s4306_s16, %s4306_s16 }
  0x82   :  { %p4313_p6 = por %p4312_p5, %p4311_p4 }
  0x84   :  { %p4314_p7 = pnand %p4313_p6, %p4307_p3 }
  0x86   :  { %4317 = shalt.err (!%p4314_p7)
}
  0x87   :  { %s4366_s8 = smov 64   ;;  %s4367_s17 = smov 4  }
  0x88   :  { %116 = dma.hbm_to_vmem [thread:$0]  %s4666_s10, 2048, %s111_s30, [#allocation15], %s4366_s8, %s4366_s8, %s4367_s17  }
  0x89   :  { %4340 = dma.done.wait [#allocation3], 64  }
  0x8a   :  { %4341 = vsyncadd [#allocation3], 4294967232 }
  0x8b   :  { %4342 = dma.done.wait [#allocation6], 1536  }
  0x8c   :  { %4343 = vsyncadd [#allocation6], 4294965760 }
  0x8d   :  { %4344 = dma.done.wait [#allocation9], 4352  }
  0x8e   :  { %4345 = vsyncadd [#allocation9], 4294962944 }
  0x8f   :  { %4346 = dma.done.wait [#allocation12], 40960  }
  0x90   :  { %4347 = vsyncadd [#allocation12], 4294926336 }
  0x91   :  { %4348 = dma.done.wait [#allocation15], 2048  }
  0x92   :  { %4349 = vsyncadd [#allocation15], 4294965248  ;;  %v4368_v0 = vmov 0   ;;  %v145_v1 = vld [vmem:[#allocation10] sm:$0xff]  ;;  %v148_v15 = vld [vmem:[#allocation10 + $0x18] sm:$0xff]  ;;  %vm379_vm0 = vcmask 523264  }
  0x93   :  { %415 = vmatprep.mubr.bf16.mxu0 %v4368_v0  ;;  %538 = vmatprep.mubr.bf16.mxu1 %v4368_v0  ;;  %v149_v2 = vld [vmem:[#allocation10 + $0x20] sm:$0xff]  ;;  %v152_v16 = vld [vmem:[#allocation10 + $0x38] sm:$0xff]  ;;  %v146_v18 = vld [vmem:[#allocation10 + $0x8] sm:$0xff]  ;;  %s4369_s0 = smov [#allocation16]  }
  0x94   :  { %v153_v3 = vld [vmem:[#allocation10 + $0x40] sm:$0xff]  ;;  %v3197_v4 = vcombine.high %v145_v1, %v149_v2  ;;  %v3196_v5 = vcombine.low %v145_v1, %v149_v2  ;;  %v3203_v19 = vcombine.high %v148_v15, %v152_v16  ;;  %v3202_v20 = vcombine.low %v148_v15, %v152_v16  ;;  %v156_v21 = vld [vmem:[#allocation10 + $0x58] sm:$0xff]  ;;  %v150_v23 = vld [vmem:[#allocation10 + $0x28] sm:$0xff]  ;;  %s3183_s23 = sshll.u32 %s4369_s0, 4  ;;  %s3184_s23 = int_to_ptr.vmem [resolvable:$true] %s3183_s23 }
  0x95   :  { %v157_v6 = vld [vmem:[#allocation10 + $0x60] sm:$0xff]  ;;  %v160_v22 = vld [vmem:[#allocation10 + $0x78] sm:$0xff]  ;;  %v3199_v29 = vcombine.high %v146_v18, %v150_v23  ;;  %v154_v30 = vld [vmem:[#allocation10 + $0x48] sm:$0xff]  ;;  %v3198_v36 = vcombine.low %v146_v18, %v150_v23  ;;  %s4318_s25 = scalar_lea.vmem %s3184_s23, 128  ;;  %p4323_p9 = scmp.lt.s32.totalorder %s3184_s23, %s3184_s23 }
  0x96   :  { %v3205_v7 = vcombine.high %v153_v3, %v157_v6  ;;  %v161_v8 = vld [vmem:[#allocation10 + $0x80] sm:$0xff]  ;;  %383 = vmatprep.subr.bf16.mxu0 %v3197_v4  ;;  %v3204_v10 = vcombine.low %v153_v3, %v157_v6  ;;  %v3211_v24 = vcombine.high %v156_v21, %v160_v22  ;;  %v164_v25 = vld [vmem:[#allocation10 + $0x98] sm:$0xff]  ;;  %506 = vmatprep.subr.bf16.mxu1 %v3203_v19  ;;  %v158_v32 = vld [vmem:[#allocation10 + $0x68] sm:$0xff]  ;;  %p4319_p8 = scmp.ne.s32.totalorder %s3184_s23, %s4318_s25  ;;  %p4324_p10 = scmp.lt.s32.totalorder %s4318_s25, %s4318_s25 }
  0x97   :  { %v165_v9 = vld [vmem:[#allocation10 + $0xa0] sm:$0xff]  ;;  %384 = vmatpush1.bf16.msra.mxu0 %v3196_v5  ;;  %v168_v26 = vld [vmem:[#allocation10 + $0xb8] sm:$0xff]  ;;  %507 = vmatpush1.bf16.msra.mxu1 %v3202_v20  ;;  %v3210_v28 = vcombine.low %v156_v21, %v160_v22  ;;  %v4533_v35 = vld [vmem:[#allocation2] sm:$0xf]  ;;  %v3207_v37 = vcombine.high %v154_v30, %v158_v32  ;;  %v3206_v42 = vcombine.low %v154_v30, %v158_v32 }
  0x98   :  { %385 = vmatprep.subr.bf16.mxu0 %v3205_v7  ;;  %v3213_v11 = vcombine.high %v161_v8, %v165_v9  ;;  %v169_v12 = vld [vmem:[#allocation10 + $0xc0] sm:$0xff]  ;;  %v3212_v14 = vcombine.low %v161_v8, %v165_v9  ;;  %508 = vmatprep.subr.bf16.mxu1 %v3211_v24  ;;  %v3219_v31 = vcombine.high %v164_v25, %v168_v26  ;;  %v172_v33 = vld [vmem:[#allocation10 + $0xd8] sm:$0xff]  ;;  %v162_v39 = vld [vmem:[#allocation10 + $0x88] sm:$0xff]  ;;  %p4325_p11 = por %p4324_p10, %p4323_p9 }
  0x99   :  { %v173_v13 = vld [vmem:[#allocation10 + $0xe0] sm:$0xff]  ;;  %v176_v34 = vld [vmem:[#allocation10 + $0xf8] sm:$0xff]  ;;  %v3218_v38 = vcombine.low %v164_v25, %v168_v26  ;;  %v166_v40 = vld [vmem:[#allocation10 + $0xa8] sm:$0xff] }
  0x9a   :  { %v3221_v17 = vcombine.high %v169_v12, %v173_v13  ;;  %v3220_v27 = vcombine.low %v169_v12, %v173_v13  ;;  %v3227_v41 = vcombine.high %v172_v33, %v176_v34  ;;  %v3215_v43 = vcombine.high %v162_v39, %v166_v40  ;;  %v170_v44 = vld [vmem:[#allocation10 + $0xc8] sm:$0xff]  ;;  %v3644_v47 = vld [vmem:[#allocation11 + $0x4] ss:$16 sps:$4 sm:$0xff]   ;;  %v3642_v51 = vld [vmem:[#allocation11] ss:$16 sps:$4 sm:$0xff]   ;;  %p4326_p12 = pnand %p4325_p11, %p4319_p8 }
  0x9b   :  { %386 = vmatpush1.bf16.msra.mxu0 %v3204_v10  ;;  %509 = vmatpush1.bf16.msra.mxu1 %v3210_v28  ;;  %v3226_v45 = vcombine.low %v172_v33, %v176_v34  ;;  %v174_v46 = vld [vmem:[#allocation10 + $0xe8] sm:$0xff]  ;;  %v3214_v48 = vcombine.low %v162_v39, %v166_v40  ;;  %v147_v50 = vld [vmem:[#allocation10 + $0x10] sm:$0xff] }
  0x9c   :  { %387 = vmatprep.subr.bf16.mxu0 %v3213_v11  ;;  %510 = vmatprep.subr.bf16.mxu1 %v3219_v31  ;;  %v3223_v49 = vcombine.high %v170_v44, %v174_v46  ;;  %v151_v52 = vld [vmem:[#allocation10 + $0x30] sm:$0xff]  ;;  %v3222_v54 = vcombine.low %v170_v44, %v174_v46 }
  0x9d   :  { %v3647_v53 = vld [vmem:[#allocation11 + $0x24] ss:$16 sps:$4 sm:$0xff]   ;;  %v3201_v55 = vcombine.high %v147_v50, %v151_v52  ;;  %v3645_v57 = vld [vmem:[#allocation11 + $0x20] ss:$16 sps:$4 sm:$0xff]   ;;  %v3200_v60 = vcombine.low %v147_v50, %v151_v52 }
  0x9e   :  { %v155_v56 = vld [vmem:[#allocation10 + $0x50] sm:$0xff] }
  0x9f   :  { %388 = vmatpush1.bf16.msra.mxu0 %v3212_v14  ;;  %511 = vmatpush1.bf16.msra.mxu1 %v3218_v38  ;;  %v159_v58 = vld [vmem:[#allocation10 + $0x70] sm:$0xff] }
  0xa0   :  { %389 = vmatprep.subr.bf16.mxu0 %v3221_v17  ;;  %512 = vmatprep.subr.bf16.mxu1 %v3227_v41  ;;  %v3650_v59 = vld [vmem:[#allocation11 + $0x44] ss:$16 sps:$4 sm:$0xff]   ;;  %v3209_v61 = vcombine.high %v155_v56, %v159_v58  ;;  %v3648_v63 = vld [vmem:[#allocation11 + $0x40] ss:$16 sps:$4 sm:$0xff]   ;;  %v3208_v3 = vcombine.low %v155_v56, %v159_v58 }
  0xa1   :  { %v163_v62 = vld [vmem:[#allocation10 + $0x90] sm:$0xff] }
  0xa2   :  { %v167_v1 = vld [vmem:[#allocation10 + $0xb0] sm:$0xff] }
  0xa3   :  { %390 = vmatpush1.bf16.msra.mxu0 %v3220_v27  ;;  %513 = vmatpush1.bf16.msra.mxu1 %v3226_v45  ;;  %v3653_v2 = vld [vmem:[#allocation11 + $0x64] ss:$16 sps:$4 sm:$0xff]   ;;  %v3217_v4 = vcombine.high %v163_v62, %v167_v1  ;;  %v3651_v6 = vld [vmem:[#allocation11 + $0x60] ss:$16 sps:$4 sm:$0xff]   ;;  %v3216_v9 = vcombine.low %v163_v62, %v167_v1 }
  0xa4   :  { %424 = vmatprep.subr.bf16.mxu0 %v3199_v29  ;;  %2153 = vmatprep.subr.bf16.mxu1 %v3644_v47  ;;  %v171_v5 = vld [vmem:[#allocation10 + $0xd0] sm:$0xff] }
  0xa5   :  { %v175_v7 = vld [vmem:[#allocation10 + $0xf0] sm:$0xff] }
  0xa6   :  { %3228 = vmatmul.mubr.msk.bf16.vlgmr.msra.gmra.mrb[0].mxu0 %vm379_vm0, %v4533_v35  ;;  %3231 = vmatmul.mubr.msk.bf16.vlgmr.msra.gmra.mrb[0].mxu1 %vm379_vm0, %v4533_v35  ;;  %v3656_v8 = vld [vmem:[#allocation11 + $0x84] ss:$16 sps:$4 sm:$0xff]   ;;  %v3225_v10 = vcombine.high %v171_v5, %v175_v7  ;;  %v3654_v11 = vld [vmem:[#allocation11 + $0x80] ss:$16 sps:$4 sm:$0xff]  }
  0xa7   :  { %425 = vmatpush1.bf16.msra.mxu0 %v3198_v36  ;;  %456 = vmatprep.mubr.bf16.mxu0 %v4368_v0  ;;  %v3662_v12 = vld [vmem:[#allocation11 + $0xa4] ss:$16 sps:$4 sm:$0xff]   ;;  %v3660_v14 = vld [vmem:[#allocation11 + $0xa0] ss:$16 sps:$4 sm:$0xff]  }
  0xa8   :  { %426 = vmatprep.subr.bf16.mxu0 %v3207_v37  ;;  %2154 = vmatpush1.bf16.msra.mxu1 %v3642_v51  ;;  %v3659_v13 = vld [vmem:[#allocation11 + $0x204] ss:$16 sps:$4 sm:$0xff]   ;;  %v3657_v16 = vld [vmem:[#allocation11 + $0x200] ss:$16 sps:$4 sm:$0xff]  }
  0xa9   :  { %2155 = vmatprep.subr.bf16.mxu1 %v3647_v53  ;;  %v3668_v15 = vld [vmem:[#allocation11 + $0xc4] ss:$16 sps:$4 sm:$0xff]   ;;  %v3666_v18 = vld [vmem:[#allocation11 + $0xc0] ss:$16 sps:$4 sm:$0xff]  }
  0xaa   :  { %v3665_v17 = vld [vmem:[#allocation11 + $0x224] ss:$16 sps:$4 sm:$0xff]   ;;  %v3663_v20 = vld [vmem:[#allocation11 + $0x220] ss:$16 sps:$4 sm:$0xff]  }
  0xab   :  { %427 = vmatpush1.bf16.msra.mxu0 %v3206_v42  ;;  %v3674_v19 = vld [vmem:[#allocation11 + $0xe4] ss:$16 sps:$4 sm:$0xff]   ;;  %v3672_v22 = vld [vmem:[#allocation11 + $0xe0] ss:$16 sps:$4 sm:$0xff]  }
  0xac   :  { %428 = vmatprep.subr.bf16.mxu0 %v3215_v43  ;;  %2156 = vmatpush1.bf16.msra.mxu1 %v3645_v57  ;;  %v3671_v21 = vld [vmem:[#allocation11 + $0x244] ss:$16 sps:$4 sm:$0xff]   ;;  %v3669_v24 = vld [vmem:[#allocation11 + $0x240] ss:$16 sps:$4 sm:$0xff]  }
  0xad   :  { %2157 = vmatprep.subr.bf16.mxu1 %v3650_v59  ;;  %v3680_v23 = vld [vmem:[#allocation11 + $0x104] ss:$16 sps:$4 sm:$0xff]   ;;  %v3678_v26 = vld [vmem:[#allocation11 + $0x100] ss:$16 sps:$4 sm:$0xff]   ;;  %v3731_v59 = vld [vmem:[#allocation11 + $0xc] ss:$16 sps:$4 sm:$0xff]  }
  0xae   :  { %v3677_v25 = vld [vmem:[#allocation11 + $0x264] ss:$16 sps:$4 sm:$0xff]   ;;  %v3675_v28 = vld [vmem:[#allocation11 + $0x260] ss:$16 sps:$4 sm:$0xff]  }
  0xaf   :  { %429 = vmatpush1.bf16.msra.mxu0 %v3214_v48  ;;  %v3686_v27 = vld [vmem:[#allocation11 + $0x124] ss:$16 sps:$4 sm:$0xff]   ;;  %v3684_v30 = vld [vmem:[#allocation11 + $0x120] ss:$16 sps:$4 sm:$0xff]  }
  0xb0   :  { %430 = vmatprep.subr.bf16.mxu0 %v3223_v49  ;;  %2158 = vmatpush1.bf16.msra.mxu1 %v3648_v63  ;;  %v3683_v29 = vld [vmem:[#allocation11 + $0x284] ss:$16 sps:$4 sm:$0xff]   ;;  %v3681_v32 = vld [vmem:[#allocation11 + $0x280] ss:$16 sps:$4 sm:$0xff]  }
  0xb1   :  { %2159 = vmatprep.subr.bf16.mxu1 %v3653_v2  ;;  %v3692_v31 = vld [vmem:[#allocation11 + $0x144] ss:$16 sps:$4 sm:$0xff]   ;;  %v3690_v34 = vld [vmem:[#allocation11 + $0x140] ss:$16 sps:$4 sm:$0xff]  }
  0xb2   :  { %v3689_v33 = vld [vmem:[#allocation11 + $0x2a4] ss:$16 sps:$4 sm:$0xff]   ;;  %v3687_v36 = vld [vmem:[#allocation11 + $0x2a0] ss:$16 sps:$4 sm:$0xff]  }
  0xb3   :  { %431 = vmatpush1.bf16.msra.mxu0 %v3222_v54  ;;  %v3695_v37 = vld [vmem:[#allocation11 + $0x2c4] ss:$16 sps:$4 sm:$0xff]   ;;  %v3696_v38 = vld [vmem:[#allocation11 + $0x160] ss:$16 sps:$4 sm:$0xff]  }
  0xb4   :  { %465 = vmatprep.subr.bf16.mxu0 %v3201_v55  ;;  %2160 = vmatpush1.bf16.msra.mxu1 %v3651_v6  ;;  %v3704_v39 = vld [vmem:[#allocation11 + $0x184] ss:$16 sps:$4 sm:$0xff]   ;;  %v3693_v40 = vld [vmem:[#allocation11 + $0x2c0] ss:$16 sps:$4 sm:$0xff]  }
  0xb5   :  { %2161 = vmatprep.subr.bf16.mxu1 %v3656_v8  ;;  %v3701_v41 = vld [vmem:[#allocation11 + $0x2e4] ss:$16 sps:$4 sm:$0xff]   ;;  %v3702_v42 = vld [vmem:[#allocation11 + $0x180] ss:$16 sps:$4 sm:$0xff]  }
  0xb6   :  { %3229 = vmatmul.mubr.msk.bf16.vlgmr.msra.gmra.mrb[4].mxu0 %vm379_vm0, %v4533_v35  ;;  %v3710_v43 = vld [vmem:[#allocation11 + $0x1a4] ss:$16 sps:$4 sm:$0xff]   ;;  %v3699_v44 = vld [vmem:[#allocation11 + $0x2e0] ss:$16 sps:$4 sm:$0xff]  }
  0xb7   :  { %466 = vmatpush1.bf16.msra.mxu0 %v3200_v60  ;;  %497 = vmatprep.mubr.bf16.mxu0 %v4368_v0  ;;  %v3224_v0 = vcombine.low %v171_v5, %v175_v7  ;;  %v3707_v45 = vld [vmem:[#allocation11 + $0x304] ss:$16 sps:$4 sm:$0xff]   ;;  %v3708_v46 = vld [vmem:[#allocation11 + $0x1a0] ss:$16 sps:$4 sm:$0xff]   ;;  %v179_v5 = vlaneseq }
  0xb8   :  { %467 = vmatprep.subr.bf16.mxu0 %v3209_v61  ;;  %2162 = vmatpush1.bf16.msra.mxu1 %v3654_v11  ;;  %v3705_v47 = vld [vmem:[#allocation11 + $0x300] ss:$16 sps:$4 sm:$0xff]   ;;  %v3713_v48 = vld [vmem:[#allocation11 + $0x324] ss:$16 sps:$4 sm:$0xff]  }
  0xb9   :  { %2163 = vmatprep.subr.bf16.mxu1 %v3662_v12  ;;  %v3711_v49 = vld [vmem:[#allocation11 + $0x320] ss:$16 sps:$4 sm:$0xff]   ;;  %v3716_v50 = vld [vmem:[#allocation11 + $0x1c4] ss:$16 sps:$4 sm:$0xff]   ;;  %v4545_v6 = vshrl.u32 %v179_v5, 7 }
  0xba   :  { %v3719_v51 = vld [vmem:[#allocation11 + $0x344] ss:$16 sps:$4 sm:$0xff]   ;;  %v3714_v52 = vld [vmem:[#allocation11 + $0x1c0] ss:$16 sps:$4 sm:$0xff]  }
  0xbb   :  { %468 = vmatpush1.bf16.msra.mxu0 %v3208_v3  ;;  %v3717_v53 = vld [vmem:[#allocation11 + $0x340] ss:$16 sps:$4 sm:$0xff]   ;;  %v3722_v54 = vld [vmem:[#allocation11 + $0x1e4] ss:$16 sps:$4 sm:$0xff]   ;;  %v4548_v7 = vsub.s32 0, %v4545_v6 }
  0xbc   :  { %469 = vmatprep.subr.bf16.mxu0 %v3217_v4  ;;  %2164 = vmatpush1.bf16.msra.mxu1 %v3660_v14  ;;  %v3725_v55 = vld [vmem:[#allocation11 + $0x364] ss:$16 sps:$4 sm:$0xff]   ;;  %v3720_v56 = vld [vmem:[#allocation11 + $0x1e0] ss:$16 sps:$4 sm:$0xff]  }
  0xbd   :  { %2165 = vmatprep.subr.bf16.mxu1 %v3668_v15  ;;  %v3723_v57 = vld [vmem:[#allocation11 + $0x360] ss:$16 sps:$4 sm:$0xff]   ;;  %v3728_v58 = vld [vmem:[#allocation11 + $0x384] ss:$16 sps:$4 sm:$0xff]  }
  0xbe   :  { %v3726_v60 = vld [vmem:[#allocation11 + $0x380] ss:$16 sps:$4 sm:$0xff]   ;;  %v3734_v62 = vld [vmem:[#allocation11 + $0x3a4] ss:$16 sps:$4 sm:$0xff]  }
  0xbf   :  { %470 = vmatpush1.bf16.msra.mxu0 %v3216_v9  ;;  %v3732_v61 = vld [vmem:[#allocation11 + $0x3a0] ss:$16 sps:$4 sm:$0xff]   ;;  %v3740_v63 = vld [vmem:[#allocation11 + $0x3c4] ss:$16 sps:$4 sm:$0xff]   ;;  %v4556_v9 = vsub.s32 1, %v4545_v6 }
  0xc0   :  { %471 = vmatprep.subr.bf16.mxu0 %v3225_v10  ;;  %2166 = vmatpush1.bf16.msra.mxu1 %v3666_v18  ;;  %v3738_v1 = vld [vmem:[#allocation11 + $0x3c0] ss:$16 sps:$4 sm:$0xff]   ;;  %v3746_v2 = vld [vmem:[#allocation11 + $0x3e4] ss:$16 sps:$4 sm:$0xff]  }
  0xc1   :  { %2167 = vmatprep.subr.bf16.mxu1 %v3674_v19  ;;  %v3744_v3 = vld [vmem:[#allocation11 + $0x3e0] ss:$16 sps:$4 sm:$0xff]   ;;  %v3752_v4 = vld [vmem:[#allocation11 + $0x404] ss:$16 sps:$4 sm:$0xff]  }
  0xc2   :  { %v4553_v8 = vld [vmem:[%s4661_s5] sm:$0xff] }
  0xc3   :  { %472 = vmatpush1.bf16.msra.mxu0 %v3224_v0  ;;  %v182_v10 = vrot.slane %v4553_v8, %v4548_v7  ;;  %v186_v11 = vrot.slane %v4553_v8, %v4556_v9 }
  0xc4   :  { %2194 = vmatprep.subr.bf16.mxu0 %v3659_v13  ;;  %2168 = vmatpush1.bf16.msra.mxu1 %v3672_v22 }
  0xc5   :  { %2169 = vmatprep.subr.bf16.mxu1 %v3680_v23 }
  0xc6   :  { %3230 = vmatmul.mubr.msk.bf16.vlgmr.msra.gmra.mrb[8].mxu0 %vm379_vm0, %v4533_v35  ;;  %v3698_v35 = vld [vmem:[#allocation11 + $0x164] ss:$16 sps:$4 sm:$0xff]  }
  0xc7   :  { %2195 = vmatpush1.bf16.msra.mxu0 %v3657_v16 }
  0xc8   :  { %2196 = vmatprep.subr.bf16.mxu0 %v3665_v17  ;;  %2170 = vmatpush1.bf16.msra.mxu1 %v3678_v26  ;;  %v571_v17 = vld [vmem:[#allocation5] sm:$0xff]  ;;  %v3729_v26 = vld [vmem:[#allocation11 + $0x8] ss:$16 sps:$4 sm:$0xff]  }
  0xc9   :  { %2171 = vmatprep.subr.bf16.mxu1 %v3686_v27  ;;  %v189_v27 = vsub.s32 2, %v4545_v6 }
  0xcb   :  { %2197 = vmatpush1.bf16.msra.mxu0 %v3663_v20  ;;  %v572_v20 = vld [vmem:[#allocation5 + $0x8] sm:$0xff] }
  0xcc   :  { %2198 = vmatprep.subr.bf16.mxu0 %v3671_v21  ;;  %2172 = vmatpush1.bf16.msra.mxu1 %v3684_v30  ;;  %v193_v30 = vsub.s32 3, %v4545_v6 }
  0xcd   :  { %2173 = vmatprep.subr.bf16.mxu1 %v3692_v31  ;;  %v3735_v31 = vld [vmem:[#allocation11 + $0x28] ss:$16 sps:$4 sm:$0xff]  }
  0xcf   :  { %2199 = vmatpush1.bf16.msra.mxu0 %v3669_v24 }
  0xd0   :  { %2200 = vmatprep.subr.bf16.mxu0 %v3677_v25  ;;  %2174 = vmatpush1.bf16.msra.mxu1 %v3690_v34  ;;  %v3743_v34 = vld [vmem:[#allocation11 + $0x4c] ss:$16 sps:$4 sm:$0xff]  }
  0xd1   :  { %2175 = vmatprep.subr.bf16.mxu1 %v3698_v35 }
  0xd3   :  { %2201 = vmatpush1.bf16.msra.mxu0 %v3675_v28 }
  0xd4   :  { %2202 = vmatprep.subr.bf16.mxu0 %v3683_v29  ;;  %2176 = vmatpush1.bf16.msra.mxu1 %v3696_v38  ;;  %v3737_v29 = vld [vmem:[#allocation11 + $0x2c] ss:$16 sps:$4 sm:$0xff]  }
  0xd5   :  { %2177 = vmatprep.subr.bf16.mxu1 %v3704_v39 }
  0xd7   :  { %2203 = vmatpush1.bf16.msra.mxu0 %v3681_v32  ;;  %v190_v32 = vrot.slane %v4553_v8, %v189_v27 }
  0xd8   :  { %2204 = vmatprep.subr.bf16.mxu0 %v3689_v33  ;;  %2178 = vmatpush1.bf16.msra.mxu1 %v3702_v42  ;;  %v194_v33 = vrot.slane %v4553_v8, %v193_v30 }
  0xd9   :  { %2179 = vmatprep.subr.bf16.mxu1 %v3710_v43  ;;  %v3749_v43 = vld [vmem:[#allocation11 + $0x6c] ss:$16 sps:$4 sm:$0xff]  }
  0xdb   :  { %2205 = vmatpush1.bf16.msra.mxu0 %v3687_v36 }
  0xdc   :  { %2206 = vmatprep.subr.bf16.mxu0 %v3695_v37  ;;  %2180 = vmatpush1.bf16.msra.mxu1 %v3708_v46 }
  0xdd   :  { %2181 = vmatprep.subr.bf16.mxu1 %v3716_v50  ;;  %v574_v50 = vld [vmem:[#allocation5 + $0x18] sm:$0xff] }
  0xdf   :  { %2207 = vmatpush1.bf16.msra.mxu0 %v3693_v40  ;;  %v3741_v40 = vld [vmem:[#allocation11 + $0x48] ss:$16 sps:$4 sm:$0xff]  }
  0xe0   :  { %2208 = vmatprep.subr.bf16.mxu0 %v3701_v41  ;;  %2182 = vmatpush1.bf16.msra.mxu1 %v3714_v52  ;;  %v3747_v52 = vld [vmem:[#allocation11 + $0x68] ss:$16 sps:$4 sm:$0xff]  }
  0xe1   :  { %2183 = vmatprep.subr.bf16.mxu1 %v3722_v54 }
  0xe3   :  { %2209 = vmatpush1.bf16.msra.mxu0 %v3699_v44 }
  0xe4   :  { %2210 = vmatprep.subr.bf16.mxu0 %v3707_v45  ;;  %2184 = vmatpush1.bf16.msra.mxu1 %v3720_v56 }
  0xe5   :  { %2317 = vmatprep.subr.bf16.mxu1 %v3731_v59  ;;  %v3750_v59 = vld [vmem:[#allocation11 + $0x400] ss:$16 sps:$4 sm:$0xff]  }
  0xe7   :  { %2211 = vmatpush1.bf16.msra.mxu0 %v3705_v47  ;;  %v573_v47 = vld [vmem:[#allocation5 + $0x10] sm:$0xff] }
  0xe8   :  { %2212 = vmatprep.subr.bf16.mxu0 %v3713_v48 }
  0xeb   :  { %2213 = vmatpush1.bf16.msra.mxu0 %v3711_v49 }
  0xec   :  { %2214 = vmatprep.subr.bf16.mxu0 %v3719_v51 }
  0xef   :  { %2215 = vmatpush1.bf16.msra.mxu0 %v3717_v53 }
  0xf0   :  { %2216 = vmatprep.subr.bf16.mxu0 %v3725_v55  ;;  %v3755_v55 = vld [vmem:[#allocation11 + $0x8c] ss:$16 sps:$4 sm:$0xff]  }
  0xf3   :  { %2217 = vmatpush1.bf16.msra.mxu0 %v3723_v57 }
  0xf4   :  { %2218 = vmatprep.subr.bf16.mxu0 %v3728_v58 }
  0xf7   :  { %2219 = vmatpush1.bf16.msra.mxu0 %v3726_v60  ;;  %v3753_v60 = vld [vmem:[#allocation11 + $0x88] ss:$16 sps:$4 sm:$0xff]  }
  0xf8   :  { %2220 = vmatprep.subr.bf16.mxu0 %v3734_v62  ;;  %v3761_v62 = vld [vmem:[#allocation11 + $0xac] ss:$16 sps:$4 sm:$0xff]  }
  0xfb   :  { %2221 = vmatpush1.bf16.msra.mxu0 %v3732_v61  ;;  %v3758_v61 = vld [vmem:[#allocation11 + $0x424] ss:$16 sps:$4 sm:$0xff]  }
  0xfc   :  { %2222 = vmatprep.subr.bf16.mxu0 %v3740_v63  ;;  %v201_v63 = vsub.s32 5, %v4545_v6 }
  0xfe   :  { %v202_v5 = vrot.slane %v4553_v8, %v201_v63  ;;  %v209_v63 = vsub.s32 7, %v4545_v6 }
  0xff   :  { %2223 = vmatpush1.bf16.msra.mxu0 %v3738_v1  ;;  %v3756_v1 = vld [vmem:[#allocation11 + $0x420] ss:$16 sps:$4 sm:$0xff]  }
 0x100   :  { %2224 = vmatprep.subr.bf16.mxu0 %v3746_v2  ;;  %v3759_v2 = vld [vmem:[#allocation11 + $0xa8] ss:$16 sps:$4 sm:$0xff]  }
 0x103   :  { %2225 = vmatpush1.bf16.msra.mxu0 %v3744_v3  ;;  %v3764_v3 = vld [vmem:[#allocation11 + $0x444] ss:$16 sps:$4 sm:$0xff]  }
 0x104   :  { %2235 = vmatprep.subr.bf16.mxu0 %v3752_v4  ;;  %v3767_v4 = vld [vmem:[#allocation11 + $0xcc] ss:$16 sps:$4 sm:$0xff]  }
 0x179   :  { %v417_v12 = vpop.f32.mrb[0].mxu0  ;;  %v4573_v35 = vpop.f32.mrb[0].mxu1 }
 0x17a   :  { %v418_v13 = vadd.f32 %v417_v12, %v182_v10  ;;  %v419_v14 = vpop.f32.mrb[1].mxu0  ;;  %v4575_v37 = vpop.f32.mrb[1].mxu1  ;;  %v3765_v12 = vld [vmem:[#allocation11 + $0xc8] ss:$16 sps:$4 sm:$0xff]  }
 0x17b   :  { %v420_v0 = vadd.f32 %v419_v14, %v186_v11  ;;  %v421_v15 = vpop.f32.mrb[2].mxu0  ;;  %v544_v41 = vpop.f32.mrb[2].mxu1  ;;  %v3762_v11 = vld [vmem:[#allocation11 + $0x440] ss:$16 sps:$4 sm:$0xff]   ;;  %v3770_v14 = vld [vmem:[#allocation11 + $0x464] ss:$16 sps:$4 sm:$0xff]  }
 0x17c   :  { %vm547_vm1 = vcmp.gt.f32.partialorder %v418_v13, 0.0  ;;  %v555_v16 = vmul.f32 0.2, %v418_v13  ;;  %v422_v18 = vpop.f32.mrb[3].mxu0  ;;  %v545_v45 = vpop.f32.mrb[3].mxu1 }
 0x17d   :  { %vm548_vm2 = vcmp.gt.f32.partialorder %v420_v0, 0.0  ;;  %v556_v19 = vmul.f32 0.2, %v420_v0  ;;  %v3789_v41 = vld [vmem:[#allocation11 + $0x148] ss:$16 sps:$4 sm:$0xff]  }
 0x17e   :  { %v563_v21 = vsel %vm547_vm1, %v418_v13, %v555_v16  ;;  %v3795_v45 = vld [vmem:[#allocation11 + $0x168] ss:$16 sps:$4 sm:$0xff]  }
 0x17f   :  { %v579_v22 = vmul.f32 %v571_v17, %v563_v21  ;;  %v564_v23 = vsel %vm548_vm2, %v420_v0, %v556_v19  ;;  %v3773_v0 = vld [vmem:[#allocation11 + $0xec] ss:$16 sps:$4 sm:$0xff]   ;;  %v3771_v21 = vld [vmem:[#allocation11 + $0xe8] ss:$16 sps:$4 sm:$0xff]  }
 0x180   :  { %v580_v24 = vmul.f32 %v572_v20, %v564_v23  ;;  %v576_v19 = vld [vmem:[#allocation5 + $0x28] sm:$0xff]  ;;  %v3768_v20 = vld [vmem:[#allocation11 + $0x460] ss:$16 sps:$4 sm:$0xff]  }
 0x181   :  { %v4563_v28 = vpack.c.bf16 %v579_v22, %v579_v22  ;;  %v3776_v22 = vld [vmem:[#allocation11 + $0x484] ss:$16 sps:$4 sm:$0xff]   ;;  %v3779_v23 = vld [vmem:[#allocation11 + $0x10c] ss:$16 sps:$4 sm:$0xff]  }
 0x182   :  { %v588_v25 = vpack.c.bf16 %v580_v24, %v580_v24 }
 0x184   :  { %2185 = vmatprep.mubr.bf16.mxu1 %v588_v25 }
 0x185   :  { %2186 = vmatmul.mubr.bf16.vlgmr.msra.gmra.mrb[4].mxu1 %v4563_v28 }
 0x186   :  { %2318 = vmatpush1.bf16.msra.mxu1 %v3729_v26  ;;  %2349 = vmatprep.mubr.bf16.mxu1 %v588_v25  ;;  %v3774_v26 = vld [vmem:[#allocation11 + $0x480] ss:$16 sps:$4 sm:$0xff]  }
 0x187   :  { %2319 = vmatprep.subr.bf16.mxu1 %v3737_v29  ;;  %v3777_v29 = vld [vmem:[#allocation11 + $0x108] ss:$16 sps:$4 sm:$0xff]  }
 0x189   :  { %v458_v36 = vpop.f32.mrb[4].mxu0 }
 0x18a   :  { %v459_v38 = vadd.f32 %v458_v36, %v190_v32  ;;  %2320 = vmatpush1.bf16.msra.mxu1 %v3735_v31  ;;  %v460_v39 = vpop.f32.mrb[5].mxu0  ;;  %v3782_v32 = vld [vmem:[#allocation11 + $0x4a4] ss:$16 sps:$4 sm:$0xff]   ;;  %v3783_v36 = vld [vmem:[#allocation11 + $0x128] ss:$16 sps:$4 sm:$0xff]  }
 0x18b   :  { %v461_v42 = vadd.f32 %v460_v39, %v194_v33  ;;  %2321 = vmatprep.subr.bf16.mxu1 %v3743_v34  ;;  %v462_v44 = vpop.f32.mrb[6].mxu0  ;;  %v3785_v33 = vld [vmem:[#allocation11 + $0x12c] ss:$16 sps:$4 sm:$0xff]   ;;  %v3780_v34 = vld [vmem:[#allocation11 + $0x4a0] ss:$16 sps:$4 sm:$0xff]  }
 0x18c   :  { %vm549_vm3 = vcmp.gt.f32.partialorder %v459_v38, 0.0  ;;  %v557_v46 = vmul.f32 0.2, %v459_v38  ;;  %v463_v48 = vpop.f32.mrb[7].mxu0  ;;  %v3791_v39 = vld [vmem:[#allocation11 + $0x14c] ss:$16 sps:$4 sm:$0xff]  }
 0x18d   :  { %vm550_vm4 = vcmp.gt.f32.partialorder %v461_v42, 0.0  ;;  %v558_v49 = vmul.f32 0.2, %v461_v42  ;;  %v3792_v44 = vld [vmem:[#allocation11 + $0x4e0] ss:$16 sps:$4 sm:$0xff]  }
 0x18e   :  { %v565_v51 = vsel %vm549_vm3, %v459_v38, %v557_v46  ;;  %2322 = vmatpush1.bf16.msra.mxu1 %v3741_v40  ;;  %v3788_v38 = vld [vmem:[#allocation11 + $0x4c4] ss:$16 sps:$4 sm:$0xff]   ;;  %v3786_v40 = vld [vmem:[#allocation11 + $0x4c0] ss:$16 sps:$4 sm:$0xff]  }
 0x18f   :  { %v581_v53 = vmul.f32 %v573_v47, %v565_v51  ;;  %v566_v54 = vsel %vm550_vm4, %v461_v42, %v558_v49  ;;  %2323 = vmatprep.subr.bf16.mxu1 %v3749_v43  ;;  %v3794_v42 = vld [vmem:[#allocation11 + $0x4e4] ss:$16 sps:$4 sm:$0xff]   ;;  %v3797_v43 = vld [vmem:[#allocation11 + $0x16c] ss:$16 sps:$4 sm:$0xff]   ;;  %v3798_v48 = vld [vmem:[#allocation11 + $0x500] ss:$16 sps:$4 sm:$0xff]  }
 0x190   :  { %v582_v56 = vmul.f32 %v574_v50, %v566_v54  ;;  %v3800_v46 = vld [vmem:[#allocation11 + $0x504] ss:$16 sps:$4 sm:$0xff]   ;;  %v3803_v47 = vld [vmem:[#allocation11 + $0x18c] ss:$16 sps:$4 sm:$0xff]   ;;  %v3801_v49 = vld [vmem:[#allocation11 + $0x188] ss:$16 sps:$4 sm:$0xff]  }
 0x191   :  { %v4577_v57 = vpack.c.bf16 %v581_v53, %v581_v53  ;;  %v3806_v50 = vld [vmem:[#allocation11 + $0x524] ss:$16 sps:$4 sm:$0xff]   ;;  %v3809_v51 = vld [vmem:[#allocation11 + $0x1ac] ss:$16 sps:$4 sm:$0xff]   ;;  %v3807_v53 = vld [vmem:[#allocation11 + $0x1a8] ss:$16 sps:$4 sm:$0xff]  }
 0x192   :  { %2324 = vmatpush1.bf16.msra.mxu1 %v3747_v52  ;;  %v4579_v58 = vpack.c.bf16 %v582_v56, %v582_v56  ;;  %v3804_v52 = vld [vmem:[#allocation11 + $0x520] ss:$16 sps:$4 sm:$0xff]   ;;  %v3812_v54 = vld [vmem:[#allocation11 + $0x544] ss:$16 sps:$4 sm:$0xff]  }
 0x193   :  { %2325 = vmatprep.subr.bf16.mxu1 %v3755_v55  ;;  %v3815_v55 = vld [vmem:[#allocation11 + $0x1cc] ss:$16 sps:$4 sm:$0xff]   ;;  %v3810_v56 = vld [vmem:[#allocation11 + $0x540] ss:$16 sps:$4 sm:$0xff]  }
 0x194   :  { %2226 = vmatprep.mubr.bf16.mxu0 %v4579_v58 }
 0x195   :  { %2227 = vmatmul.mubr.bf16.vlgmr.msra.gmra.mrb[12].mxu0 %v4577_v57 }
 0x196   :  { %2236 = vmatpush1.bf16.msra.mxu0 %v3750_v59  ;;  %2326 = vmatpush1.bf16.msra.mxu1 %v3753_v60  ;;  %v3813_v59 = vld [vmem:[#allocation11 + $0x1c8] ss:$16 sps:$4 sm:$0xff]   ;;  %v197_v60 = vsub.s32 4, %v4545_v6 }
 0x197   :  { %2237 = vmatprep.subr.bf16.mxu0 %v3758_v61  ;;  %2327 = vmatprep.subr.bf16.mxu1 %v3761_v62  ;;  %v3818_v61 = vld [vmem:[#allocation11 + $0x564] ss:$16 sps:$4 sm:$0xff]   ;;  %v3821_v62 = vld [vmem:[#allocation11 + $0x1ec] ss:$16 sps:$4 sm:$0xff]  }
 0x199   :  { %v4585_v10 = vpop.f32.mrb[8].mxu0 }
 0x19a   :  { %2238 = vmatpush1.bf16.msra.mxu0 %v3756_v1  ;;  %2328 = vmatpush1.bf16.msra.mxu1 %v3759_v2  ;;  %v501_v13 = vpop.f32.mrb[9].mxu0  ;;  %v3816_v1 = vld [vmem:[#allocation11 + $0x560] ss:$16 sps:$4 sm:$0xff]   ;;  %v3819_v2 = vld [vmem:[#allocation11 + $0x1e8] ss:$16 sps:$4 sm:$0xff]  }
 0x19b   :  { %2239 = vmatprep.subr.bf16.mxu0 %v3764_v3  ;;  %2329 = vmatprep.subr.bf16.mxu1 %v3767_v4  ;;  %v502_v15 = vadd.f32 %v501_v13, %v202_v5  ;;  %v503_v16 = vpop.f32.mrb[10].mxu0  ;;  %v198_v3 = vrot.slane %v4553_v8, %v197_v60  ;;  %v3824_v4 = vld [vmem:[#allocation11 + $0x584] ss:$16 sps:$4 sm:$0xff]   ;;  %v3827_v5 = vld [vmem:[#allocation11 + $0x20c] ss:$16 sps:$4 sm:$0xff]  }
 0x19c   :  { %v504_v17 = vpop.f32.mrb[11].mxu0  ;;  %v3825_v13 = vld [vmem:[#allocation11 + $0x208] ss:$16 sps:$4 sm:$0xff]  }
 0x19d   :  { %vm552_vm5 = vcmp.gt.f32.partialorder %v502_v15, 0.0  ;;  %v560_v18 = vmul.f32 0.2, %v502_v15  ;;  %v3828_v17 = vld [vmem:[#allocation11 + $0x5a0] ss:$16 sps:$4 sm:$0xff]  }
 0x19e   :  { %2240 = vmatpush1.bf16.msra.mxu0 %v3762_v11  ;;  %2330 = vmatpush1.bf16.msra.mxu1 %v3765_v12  ;;  %v210_v11 = vrot.slane %v4553_v8, %v209_v63  ;;  %v3822_v12 = vld [vmem:[#allocation11 + $0x580] ss:$16 sps:$4 sm:$0xff]   ;;  %v3873_v60 = vld [vmem:[#allocation11 + $0x308] ss:$16 sps:$4 sm:$0xff]  }
 0x19f   :  { %2241 = vmatprep.subr.bf16.mxu0 %v3770_v14  ;;  %2331 = vmatprep.subr.bf16.mxu1 %v3773_v0  ;;  %v568_v24 = vsel %vm552_vm5, %v502_v15, %v560_v18  ;;  %v500_v14 = vadd.f32 %v4585_v10, %v198_v3  ;;  %v3830_v0 = vld [vmem:[#allocation11 + $0x5a4] ss:$16 sps:$4 sm:$0xff]   ;;  %v3833_v15 = vld [vmem:[#allocation11 + $0x22c] ss:$16 sps:$4 sm:$0xff]   ;;  %v3831_v18 = vld [vmem:[#allocation11 + $0x228] ss:$16 sps:$4 sm:$0xff]  }
 0x1a0   :  { %v584_v25 = vmul.f32 %v576_v19, %v568_v24  ;;  %v543_v16 = vadd.f32 %v4575_v37, %v210_v11  ;;  %v3837_v24 = vld [vmem:[#allocation11 + $0x248] ss:$16 sps:$4 sm:$0xff]   ;;  %v3842_v37 = vld [vmem:[#allocation11 + $0x5e4] ss:$16 sps:$4 sm:$0xff]   ;;  %v3876_v63 = vld [vmem:[#allocation11 + $0x6a0] ss:$16 sps:$4 sm:$0xff]  }
 0x1a1   :  { %v559_v19 = vmul.f32 0.2, %v500_v14  ;;  %vm551_vm6 = vcmp.gt.f32.partialorder %v500_v14, 0.0  ;;  %v3887_v3 = vld [vmem:[#allocation11 + $0x34c] ss:$16 sps:$4 sm:$0xff]  }
 0x1a2   :  { %2242 = vmatpush1.bf16.msra.mxu0 %v3768_v20  ;;  %2332 = vmatpush1.bf16.msra.mxu1 %v3771_v21  ;;  %v4587_v31 = vpack.c.bf16 %v584_v25, %v584_v25  ;;  %v3836_v20 = vld [vmem:[#allocation11 + $0x5c4] ss:$16 sps:$4 sm:$0xff]   ;;  %v3839_v21 = vld [vmem:[#allocation11 + $0x24c] ss:$16 sps:$4 sm:$0xff]   ;;  %v562_v10 = vmul.f32 0.2, %v543_v16 }
 0x1a3   :  { %2243 = vmatprep.subr.bf16.mxu0 %v3776_v22  ;;  %2333 = vmatprep.subr.bf16.mxu1 %v3779_v23  ;;  %v567_v22 = vsel %vm551_vm6, %v500_v14, %v559_v19  ;;  %v575_v23 = vld [vmem:[#allocation5 + $0x20] sm:$0xff]  ;;  %vm554_vm7 = vcmp.gt.f32.partialorder %v543_v16, 0.0  ;;  %v3845_v25 = vld [vmem:[#allocation11 + $0x26c] ss:$16 sps:$4 sm:$0xff]   ;;  %v3891_v14 = vld [vmem:[#allocation11 + $0x368] ss:$16 sps:$4 sm:$0xff]  }
 0x1a4   :  { %2267 = vmatprep.mubr.bf16.mxu0 %v4587_v31  ;;  %v3890_v11 = vld [vmem:[#allocation11 + $0x6e4] ss:$16 sps:$4 sm:$0xff]   ;;  %v3905_v19 = vld [vmem:[#allocation11 + $0x3ac] ss:$16 sps:$4 sm:$0xff]  }
 0x1a6   :  { %2244 = vmatpush1.bf16.msra.mxu0 %v3774_v26  ;;  %2334 = vmatpush1.bf16.msra.mxu1 %v3777_v29  ;;  %v583_v26 = vmul.f32 %v575_v23, %v567_v22  ;;  %v570_v29 = vsel %vm554_vm7, %v543_v16, %v562_v10  ;;  %v3894_v16 = vld [vmem:[#allocation11 + $0x700] ss:$16 sps:$4 sm:$0xff]   ;;  %v3908_v10 = vld [vmem:[#allocation11 + $0x744] ss:$16 sps:$4 sm:$0xff]   ;;  %v3911_v22 = vld [vmem:[#allocation11 + $0x3cc] ss:$16 sps:$4 sm:$0xff]  }
 0x1a7   :  { %2245 = vmatprep.subr.bf16.mxu0 %v3782_v32  ;;  %2335 = vmatprep.subr.bf16.mxu1 %v3785_v33  ;;  %v3840_v32 = vld [vmem:[#allocation11 + $0x5e0] ss:$16 sps:$4 sm:$0xff]   ;;  %v3843_v33 = vld [vmem:[#allocation11 + $0x268] ss:$16 sps:$4 sm:$0xff]  }
 0x1a8   :  { %v3906_v23 = vld [vmem:[#allocation11 + $0x740] ss:$16 sps:$4 sm:$0xff]  }
 0x1aa   :  { %2246 = vmatpush1.bf16.msra.mxu0 %v3780_v34  ;;  %2336 = vmatpush1.bf16.msra.mxu1 %v3783_v36  ;;  %v3848_v34 = vld [vmem:[#allocation11 + $0x604] ss:$16 sps:$4 sm:$0xff]   ;;  %v3851_v36 = vld [vmem:[#allocation11 + $0x28c] ss:$16 sps:$4 sm:$0xff]  }
 0x1ab   :  { %2247 = vmatprep.subr.bf16.mxu0 %v3788_v38  ;;  %2337 = vmatprep.subr.bf16.mxu1 %v3791_v39  ;;  %v4598_v39 = vpack.c.bf16 %v583_v26, %v583_v26  ;;  %v3912_v26 = vld [vmem:[#allocation11 + $0x760] ss:$16 sps:$4 sm:$0xff]  }
 0x1ae   :  { %2248 = vmatpush1.bf16.msra.mxu0 %v3786_v40  ;;  %2338 = vmatpush1.bf16.msra.mxu1 %v3789_v41  ;;  %v3846_v40 = vld [vmem:[#allocation11 + $0x600] ss:$16 sps:$4 sm:$0xff]   ;;  %v3849_v41 = vld [vmem:[#allocation11 + $0x288] ss:$16 sps:$4 sm:$0xff]  }
 0x1af   :  { %2249 = vmatprep.subr.bf16.mxu0 %v3794_v42  ;;  %2339 = vmatprep.subr.bf16.mxu1 %v3797_v43  ;;  %v3854_v42 = vld [vmem:[#allocation11 + $0x624] ss:$16 sps:$4 sm:$0xff]   ;;  %v3857_v43 = vld [vmem:[#allocation11 + $0x2ac] ss:$16 sps:$4 sm:$0xff]  }
 0x1b2   :  { %2250 = vmatpush1.bf16.msra.mxu0 %v3792_v44  ;;  %2340 = vmatpush1.bf16.msra.mxu1 %v3795_v45  ;;  %v3852_v45 = vld [vmem:[#allocation11 + $0x620] ss:$16 sps:$4 sm:$0xff]  }
 0x1b3   :  { %2251 = vmatprep.subr.bf16.mxu0 %v3800_v46  ;;  %2341 = vmatprep.subr.bf16.mxu1 %v3803_v47  ;;  %v3855_v46 = vld [vmem:[#allocation11 + $0x2a8] ss:$16 sps:$4 sm:$0xff]   ;;  %v3860_v47 = vld [vmem:[#allocation11 + $0x644] ss:$16 sps:$4 sm:$0xff]  }
 0x1b6   :  { %2252 = vmatpush1.bf16.msra.mxu0 %v3798_v48  ;;  %2342 = vmatpush1.bf16.msra.mxu1 %v3801_v49  ;;  %v3863_v48 = vld [vmem:[#allocation11 + $0x2cc] ss:$16 sps:$4 sm:$0xff]   ;;  %v3858_v49 = vld [vmem:[#allocation11 + $0x640] ss:$16 sps:$4 sm:$0xff]  }
 0x1b7   :  { %2253 = vmatprep.subr.bf16.mxu0 %v3806_v50  ;;  %2343 = vmatprep.subr.bf16.mxu1 %v3809_v51  ;;  %v3861_v50 = vld [vmem:[#allocation11 + $0x2c8] ss:$16 sps:$4 sm:$0xff]   ;;  %v3866_v51 = vld [vmem:[#allocation11 + $0x664] ss:$16 sps:$4 sm:$0xff]  }
 0x1ba   :  { %2254 = vmatpush1.bf16.msra.mxu0 %v3804_v52  ;;  %2344 = vmatpush1.bf16.msra.mxu1 %v3807_v53  ;;  %v3869_v52 = vld [vmem:[#allocation11 + $0x2ec] ss:$16 sps:$4 sm:$0xff]   ;;  %v3864_v53 = vld [vmem:[#allocation11 + $0x660] ss:$16 sps:$4 sm:$0xff]  }
 0x1bb   :  { %2255 = vmatprep.subr.bf16.mxu0 %v3812_v54  ;;  %2345 = vmatprep.subr.bf16.mxu1 %v3815_v55  ;;  %v3867_v54 = vld [vmem:[#allocation11 + $0x2e8] ss:$16 sps:$4 sm:$0xff]   ;;  %v3872_v55 = vld [vmem:[#allocation11 + $0x684] ss:$16 sps:$4 sm:$0xff]  }
 0x1be   :  { %2256 = vmatpush1.bf16.msra.mxu0 %v3810_v56  ;;  %2346 = vmatpush1.bf16.msra.mxu1 %v3813_v59  ;;  %v3875_v56 = vld [vmem:[#allocation11 + $0x30c] ss:$16 sps:$4 sm:$0xff]   ;;  %v3870_v59 = vld [vmem:[#allocation11 + $0x680] ss:$16 sps:$4 sm:$0xff]  }
 0x1bf   :  { %2257 = vmatprep.subr.bf16.mxu0 %v3818_v61  ;;  %2347 = vmatprep.subr.bf16.mxu1 %v3821_v62  ;;  %v3878_v61 = vld [vmem:[#allocation11 + $0x6a4] ss:$16 sps:$4 sm:$0xff]   ;;  %v3881_v62 = vld [vmem:[#allocation11 + $0x32c] ss:$16 sps:$4 sm:$0xff]  }
 0x1c2   :  { %2258 = vmatpush1.bf16.msra.mxu0 %v3816_v1  ;;  %2348 = vmatpush1.bf16.msra.mxu1 %v3819_v2  ;;  %v3879_v1 = vld [vmem:[#allocation11 + $0x328] ss:$16 sps:$4 sm:$0xff]   ;;  %v3884_v2 = vld [vmem:[#allocation11 + $0x6c4] ss:$16 sps:$4 sm:$0xff]  }
 0x1c3   :  { %2259 = vmatprep.subr.bf16.mxu0 %v3824_v4  ;;  %2358 = vmatprep.subr.bf16.mxu1 %v3827_v5  ;;  %v3882_v4 = vld [vmem:[#allocation11 + $0x6c0] ss:$16 sps:$4 sm:$0xff]   ;;  %v3885_v5 = vld [vmem:[#allocation11 + $0x348] ss:$16 sps:$4 sm:$0xff]  }
 0x1c5   :  { %2350 = vmatmul.mubr.bf16.vlgmr.msra.gmra.mrb[8].mxu1 %v4563_v28  ;;  %v3834_v28 = vld [vmem:[#allocation11 + $0x5c0] ss:$16 sps:$4 sm:$0xff]  }
 0x1c6   :  { %2260 = vmatpush1.bf16.msra.mxu0 %v3822_v12  ;;  %2359 = vmatpush1.bf16.msra.mxu1 %v3825_v13  ;;  %v3893_v12 = vld [vmem:[#allocation11 + $0x36c] ss:$16 sps:$4 sm:$0xff]   ;;  %v3888_v13 = vld [vmem:[#allocation11 + $0x6e0] ss:$16 sps:$4 sm:$0xff]  }
 0x1c7   :  { %2390 = vmatprep.mubr.bf16.mxu1 %v4579_v58  ;;  %2261 = vmatprep.subr.bf16.mxu0 %v3830_v0  ;;  %v578_v58 = vld [vmem:[#allocation5 + $0x38] sm:$0xff]  ;;  %v3896_v0 = vld [vmem:[#allocation11 + $0x704] ss:$16 sps:$4 sm:$0xff]  }
 0x1c8   :  { %2360 = vmatprep.subr.bf16.mxu1 %v3833_v15  ;;  %v586_v38 = vmul.f32 %v578_v58, %v570_v29  ;;  %v3899_v15 = vld [vmem:[#allocation11 + $0x38c] ss:$16 sps:$4 sm:$0xff]   ;;  %v3915_v29 = vld [vmem:[#allocation11 + $0x3e8] ss:$16 sps:$4 sm:$0xff]  }
 0x1ca   :  { %2262 = vmatpush1.bf16.msra.mxu0 %v3828_v17  ;;  %2361 = vmatpush1.bf16.msra.mxu1 %v3831_v18  ;;  %v4600_v44 = vpack.c.bf16 %v586_v38, %v586_v38  ;;  %v3897_v17 = vld [vmem:[#allocation11 + $0x388] ss:$16 sps:$4 sm:$0xff]   ;;  %v3902_v18 = vld [vmem:[#allocation11 + $0x724] ss:$16 sps:$4 sm:$0xff]  }
 0x1cb   :  { %2263 = vmatprep.subr.bf16.mxu0 %v3836_v20  ;;  %2362 = vmatprep.subr.bf16.mxu1 %v3839_v21  ;;  %v3900_v20 = vld [vmem:[#allocation11 + $0x720] ss:$16 sps:$4 sm:$0xff]   ;;  %v3903_v21 = vld [vmem:[#allocation11 + $0x3a8] ss:$16 sps:$4 sm:$0xff]  }
 0x1ce   :  { %2264 = vmatpush1.bf16.msra.mxu0 %v3834_v28  ;;  %2363 = vmatpush1.bf16.msra.mxu1 %v3837_v24  ;;  %v3909_v28 = vld [vmem:[#allocation11 + $0x3c8] ss:$16 sps:$4 sm:$0xff]   ;;  %v205_v24 = vsub.s32 6, %v4545_v6 }
 0x1cf   :  { %2265 = vmatprep.subr.bf16.mxu0 %v3842_v37  ;;  %2364 = vmatprep.subr.bf16.mxu1 %v3845_v25  ;;  %v3914_v37 = vld [vmem:[#allocation11 + $0x764] ss:$16 sps:$4 sm:$0xff]   ;;  %v3917_v25 = vld [vmem:[#allocation11 + $0x3ec] ss:$16 sps:$4 sm:$0xff]  }
 0x1d0   :  { %v206_v58 = vrot.slane %v4553_v8, %v205_v24  ;;  %v3924_v8 = vld [vmem:[#allocation11 + $0x7a0] ss:$16 sps:$4 sm:$0xff]   ;;  %v4049_v24 = vld [vmem:[#allocation13 + $0x74] ss:$8 sps:$4 sm:$0xff]  }
 0x1d2   :  { %2266 = vmatpush1.bf16.msra.mxu0 %v3840_v32  ;;  %2365 = vmatpush1.bf16.msra.mxu1 %v3843_v33  ;;  %v3920_v32 = vld [vmem:[#allocation11 + $0x784] ss:$16 sps:$4 sm:$0xff]   ;;  %v3923_v33 = vld [vmem:[#allocation11 + $0x40c] ss:$16 sps:$4 sm:$0xff]   ;;  %v541_v38 = vadd.f32 %v4573_v35, %v206_v58  ;;  %v3966_v58 = vld [vmem:[#allocation11 + $0x588] ss:$16 sps:$4 sm:$0xff]  }
 0x1d3   :  { %2276 = vmatprep.subr.bf16.mxu0 %v3848_v34  ;;  %2366 = vmatprep.subr.bf16.mxu1 %v3851_v36  ;;  %v3918_v34 = vld [vmem:[#allocation11 + $0x780] ss:$16 sps:$4 sm:$0xff]   ;;  %v3921_v36 = vld [vmem:[#allocation11 + $0x408] ss:$16 sps:$4 sm:$0xff]  }
 0x1d4   :  { %vm553_vm8 = vcmp.gt.f32.partialorder %v541_v38, 0.0  ;;  %v577_v35 = vld [vmem:[#allocation5 + $0x30] sm:$0xff] }
 0x1d5   :  { %2268 = vmatmul.mubr.bf16.vlgmr.msra.gmra.mrb[12].mxu0 %v4598_v39 }
 0x1d6   :  { %2277 = vmatpush1.bf16.msra.mxu0 %v3846_v40  ;;  %2367 = vmatpush1.bf16.msra.mxu1 %v3849_v41  ;;  %v3926_v40 = vld [vmem:[#allocation11 + $0x7a4] ss:$16 sps:$4 sm:$0xff]   ;;  %v3929_v41 = vld [vmem:[#allocation11 + $0x42c] ss:$16 sps:$4 sm:$0xff]  }
 0x1d7   :  { %2278 = vmatprep.subr.bf16.mxu0 %v3854_v42  ;;  %2368 = vmatprep.subr.bf16.mxu1 %v3857_v43  ;;  %v561_v42 = vmul.f32 0.2, %v541_v38  ;;  %v3927_v43 = vld [vmem:[#allocation11 + $0x428] ss:$16 sps:$4 sm:$0xff]  }
 0x1d8   :  { %2308 = vmatprep.mubr.bf16.mxu0 %v4600_v44 }
 0x1da   :  { %2279 = vmatpush1.bf16.msra.mxu0 %v3852_v45  ;;  %2369 = vmatpush1.bf16.msra.mxu1 %v3855_v46  ;;  %v3932_v45 = vld [vmem:[#allocation11 + $0x7c4] ss:$16 sps:$4 sm:$0xff]   ;;  %v3935_v46 = vld [vmem:[#allocation11 + $0x44c] ss:$16 sps:$4 sm:$0xff]  }
 0x1db   :  { %2280 = vmatprep.subr.bf16.mxu0 %v3860_v47  ;;  %2370 = vmatprep.subr.bf16.mxu1 %v3863_v48  ;;  %v569_v47 = vsel %vm553_vm8, %v541_v38, %v561_v42  ;;  %v3930_v48 = vld [vmem:[#allocation11 + $0x7c0] ss:$16 sps:$4 sm:$0xff]   ;;  %v3972_v42 = vld [vmem:[#allocation11 + $0x5c8] ss:$16 sps:$4 sm:$0xff]  }
 0x1dc   :  { %v4053_v38 = vld [vmem:[#allocation13 + $0x90] ss:$8 sps:$4 sm:$0xff]  }
 0x1de   :  { %2281 = vmatpush1.bf16.msra.mxu0 %v3858_v49  ;;  %2371 = vmatpush1.bf16.msra.mxu1 %v3861_v50  ;;  %v3933_v49 = vld [vmem:[#allocation11 + $0x448] ss:$16 sps:$4 sm:$0xff]   ;;  %v3941_v50 = vld [vmem:[#allocation11 + $0x46c] ss:$16 sps:$4 sm:$0xff]  }
 0x1df   :  { %2282 = vmatprep.subr.bf16.mxu0 %v3866_v51  ;;  %2372 = vmatprep.subr.bf16.mxu1 %v3869_v52  ;;  %v585_v51 = vmul.f32 %v577_v35, %v569_v47  ;;  %v3936_v52 = vld [vmem:[#allocation11 + $0x7e0] ss:$16 sps:$4 sm:$0xff]   ;;  %v3980_v35 = vld [vmem:[#allocation11 + $0x60c] ss:$16 sps:$4 sm:$0xff]  }
 0x1e0   :  { %v4059_v47 = vld [vmem:[#allocation13 + $0xb0] ss:$8 sps:$4 sm:$0xff]  }
 0x1e2   :  { %2283 = vmatpush1.bf16.msra.mxu0 %v3864_v53  ;;  %2373 = vmatpush1.bf16.msra.mxu1 %v3867_v54  ;;  %v3944_v53 = vld [vmem:[#allocation11 + $0x48c] ss:$16 sps:$4 sm:$0xff]  }
 0x1e3   :  { %2284 = vmatprep.subr.bf16.mxu0 %v3872_v55  ;;  %2374 = vmatprep.subr.bf16.mxu1 %v3875_v56  ;;  %v4028_v54 = vld [vmem:[#allocation13 + $0x4] ss:$8 sps:$4 sm:$0xff]   ;;  %v4609_v55 = vpack.c.bf16 %v585_v51, %v585_v51  ;;  %v3942_v56 = vld [vmem:[#allocation11 + $0x488] ss:$16 sps:$4 sm:$0xff]  }
 0x1e4   :  { %v3981_v51 = vld [vmem:[#allocation11 + $0x628] ss:$16 sps:$4 sm:$0xff]  }
 0x1e6   :  { %2285 = vmatpush1.bf16.msra.mxu0 %v3870_v59  ;;  %2375 = vmatpush1.bf16.msra.mxu1 %v3873_v60  ;;  %v4026_v59 = vld [vmem:[#allocation13] ss:$8 sps:$4 sm:$0xff]   ;;  %v3947_v60 = vld [vmem:[#allocation11 + $0x4ac] ss:$16 sps:$4 sm:$0xff]  }
 0x1e7   :  { %2286 = vmatprep.subr.bf16.mxu0 %v3878_v61  ;;  %2376 = vmatprep.subr.bf16.mxu1 %v3881_v62  ;;  %v4031_v61 = vld [vmem:[#allocation13 + $0x14] ss:$8 sps:$4 sm:$0xff]   ;;  %v3945_v62 = vld [vmem:[#allocation11 + $0x4a8] ss:$16 sps:$4 sm:$0xff]  }
 0x1ea   :  { %2287 = vmatpush1.bf16.msra.mxu0 %v3876_v63  ;;  %2377 = vmatpush1.bf16.msra.mxu1 %v3879_v1  ;;  %v4029_v63 = vld [vmem:[#allocation13 + $0x10] ss:$8 sps:$4 sm:$0xff]   ;;  %v3950_v1 = vld [vmem:[#allocation11 + $0x4cc] ss:$16 sps:$4 sm:$0xff]  }
 0x1eb   :  { %2288 = vmatprep.subr.bf16.mxu0 %v3884_v2  ;;  %2378 = vmatprep.subr.bf16.mxu1 %v3887_v3  ;;  %v4034_v2 = vld [vmem:[#allocation13 + $0x24] ss:$8 sps:$4 sm:$0xff]   ;;  %v3948_v3 = vld [vmem:[#allocation11 + $0x4c8] ss:$16 sps:$4 sm:$0xff]  }
 0x1ee   :  { %2289 = vmatpush1.bf16.msra.mxu0 %v3882_v4  ;;  %2379 = vmatpush1.bf16.msra.mxu1 %v3885_v5  ;;  %v4032_v4 = vld [vmem:[#allocation13 + $0x20] ss:$8 sps:$4 sm:$0xff]   ;;  %v3953_v5 = vld [vmem:[#allocation11 + $0x4ec] ss:$16 sps:$4 sm:$0xff]  }
 0x1ef   :  { %2290 = vmatprep.subr.bf16.mxu0 %v3890_v11  ;;  %2380 = vmatprep.subr.bf16.mxu1 %v3893_v12  ;;  %v4037_v11 = vld [vmem:[#allocation13 + $0x34] ss:$8 sps:$4 sm:$0xff]   ;;  %v3951_v12 = vld [vmem:[#allocation11 + $0x4e8] ss:$16 sps:$4 sm:$0xff]  }
 0x1f2   :  { %2291 = vmatpush1.bf16.msra.mxu0 %v3888_v13  ;;  %2381 = vmatpush1.bf16.msra.mxu1 %v3891_v14  ;;  %v4035_v13 = vld [vmem:[#allocation13 + $0x30] ss:$8 sps:$4 sm:$0xff]   ;;  %v3956_v14 = vld [vmem:[#allocation11 + $0x50c] ss:$16 sps:$4 sm:$0xff]  }
 0x1f3   :  { %2292 = vmatprep.subr.bf16.mxu0 %v3896_v0  ;;  %2382 = vmatprep.subr.bf16.mxu1 %v3899_v15  ;;  %v4040_v0 = vld [vmem:[#allocation13 + $0x44] ss:$8 sps:$4 sm:$0xff]   ;;  %v3954_v15 = vld [vmem:[#allocation11 + $0x508] ss:$16 sps:$4 sm:$0xff]  }
 0x1f6   :  { %2293 = vmatpush1.bf16.msra.mxu0 %v3894_v16  ;;  %2383 = vmatpush1.bf16.msra.mxu1 %v3897_v17  ;;  %v4038_v16 = vld [vmem:[#allocation13 + $0x40] ss:$8 sps:$4 sm:$0xff]   ;;  %v3959_v17 = vld [vmem:[#allocation11 + $0x52c] ss:$16 sps:$4 sm:$0xff]  }
 0x1f7   :  { %2294 = vmatprep.subr.bf16.mxu0 %v3902_v18  ;;  %2384 = vmatprep.subr.bf16.mxu1 %v3905_v19  ;;  %v4043_v18 = vld [vmem:[#allocation13 + $0x54] ss:$8 sps:$4 sm:$0xff]   ;;  %v3957_v19 = vld [vmem:[#allocation11 + $0x528] ss:$16 sps:$4 sm:$0xff]  }
 0x1fa   :  { %2295 = vmatpush1.bf16.msra.mxu0 %v3900_v20  ;;  %2385 = vmatpush1.bf16.msra.mxu1 %v3903_v21  ;;  %v4041_v20 = vld [vmem:[#allocation13 + $0x50] ss:$8 sps:$4 sm:$0xff]   ;;  %v3962_v21 = vld [vmem:[#allocation11 + $0x54c] ss:$16 sps:$4 sm:$0xff]  }
 0x1fb   :  { %2296 = vmatprep.subr.bf16.mxu0 %v3908_v10  ;;  %2386 = vmatprep.subr.bf16.mxu1 %v3911_v22  ;;  %v4046_v10 = vld [vmem:[#allocation13 + $0x64] ss:$8 sps:$4 sm:$0xff]   ;;  %v3960_v22 = vld [vmem:[#allocation11 + $0x548] ss:$16 sps:$4 sm:$0xff]  }
 0x1fe   :  { %2297 = vmatpush1.bf16.msra.mxu0 %v3906_v23  ;;  %2387 = vmatpush1.bf16.msra.mxu1 %v3909_v28  ;;  %v4044_v23 = vld [vmem:[#allocation13 + $0x60] ss:$8 sps:$4 sm:$0xff]   ;;  %v3965_v28 = vld [vmem:[#allocation11 + $0x56c] ss:$16 sps:$4 sm:$0xff]  }
 0x1ff   :  { %2298 = vmatprep.subr.bf16.mxu0 %v3914_v37  ;;  %2388 = vmatprep.subr.bf16.mxu1 %v3917_v25  ;;  %v3963_v37 = vld [vmem:[#allocation11 + $0x568] ss:$16 sps:$4 sm:$0xff]  }
 0x200   :  { %v4047_v25 = vld [vmem:[#allocation13 + $0x70] ss:$8 sps:$4 sm:$0xff]  }
 0x202   :  { %2299 = vmatpush1.bf16.msra.mxu0 %v3912_v26  ;;  %2389 = vmatpush1.bf16.msra.mxu1 %v3915_v29  ;;  %v3968_v26 = vld [vmem:[#allocation11 + $0x58c] ss:$16 sps:$4 sm:$0xff]  }
 0x203   :  { %2300 = vmatprep.subr.bf16.mxu0 %v3920_v32  ;;  %2399 = vmatprep.subr.bf16.mxu1 %v3923_v33  ;;  %v4052_v29 = vld [vmem:[#allocation13 + $0x84] ss:$8 sps:$4 sm:$0xff]   ;;  %v4050_v32 = vld [vmem:[#allocation13 + $0x80] ss:$8 sps:$4 sm:$0xff]  }
 0x204   :  { %v3971_v33 = vld [vmem:[#allocation11 + $0x5ac] ss:$16 sps:$4 sm:$0xff]  }
 0x205   :  { %2391 = vmatmul.mubr.bf16.vlgmr.msra.gmra.mrb[8].mxu1 %v4577_v57  ;;  %v3938_v57 = vld [vmem:[#allocation11 + $0x7e4] ss:$16 sps:$4 sm:$0xff]  }
 0x206   :  { %2301 = vmatpush1.bf16.msra.mxu0 %v3918_v34  ;;  %2400 = vmatpush1.bf16.msra.mxu1 %v3921_v36  ;;  %v4055_v34 = vld [vmem:[#allocation13 + $0x94] ss:$8 sps:$4 sm:$0xff]   ;;  %v3969_v36 = vld [vmem:[#allocation11 + $0x5a8] ss:$16 sps:$4 sm:$0xff]  }
 0x207   :  { %2431 = vmatprep.mubr.bf16.mxu1 %v4587_v31  ;;  %2302 = vmatprep.subr.bf16.mxu0 %v3926_v40  ;;  %v3939_v31 = vld [vmem:[#allocation11 + $0x468] ss:$16 sps:$4 sm:$0xff]   ;;  %v3974_v40 = vld [vmem:[#allocation11 + $0x5cc] ss:$16 sps:$4 sm:$0xff]  }
 0x208   :  { %2401 = vmatprep.subr.bf16.mxu1 %v3929_v41  ;;  %v4058_v41 = vld [vmem:[#allocation13 + $0xa4] ss:$8 sps:$4 sm:$0xff]  }
 0x20a   :  { %2303 = vmatpush1.bf16.msra.mxu0 %v3924_v8  ;;  %2402 = vmatpush1.bf16.msra.mxu1 %v3927_v43  ;;  %v4056_v8 = vld [vmem:[#allocation13 + $0xa0] ss:$8 sps:$4 sm:$0xff]   ;;  %v3977_v43 = vld [vmem:[#allocation11 + $0x5ec] ss:$16 sps:$4 sm:$0xff]  }
 0x20b   :  { %2304 = vmatprep.subr.bf16.mxu0 %v3932_v45  ;;  %2403 = vmatprep.subr.bf16.mxu1 %v3935_v46  ;;  %v4061_v45 = vld [vmem:[#allocation13 + $0xb4] ss:$8 sps:$4 sm:$0xff]   ;;  %v3975_v46 = vld [vmem:[#allocation11 + $0x5e8] ss:$16 sps:$4 sm:$0xff]  }
 0x20e   :  { %2305 = vmatpush1.bf16.msra.mxu0 %v3930_v48  ;;  %2404 = vmatpush1.bf16.msra.mxu1 %v3933_v49  ;;  %v4064_v48 = vld [vmem:[#allocation13 + $0xc4] ss:$8 sps:$4 sm:$0xff]   ;;  %v3978_v49 = vld [vmem:[#allocation11 + $0x608] ss:$16 sps:$4 sm:$0xff]  }
 0x20f   :  { %2306 = vmatprep.subr.bf16.mxu0 %v3938_v57  ;;  %2405 = vmatprep.subr.bf16.mxu1 %v3941_v50  ;;  %v3983_v57 = vld [vmem:[#allocation11 + $0x62c] ss:$16 sps:$4 sm:$0xff]   ;;  %v4062_v50 = vld [vmem:[#allocation13 + $0xc0] ss:$8 sps:$4 sm:$0xff]  }
 0x212   :  { %2307 = vmatpush1.bf16.msra.mxu0 %v3936_v52  ;;  %2406 = vmatpush1.bf16.msra.mxu1 %v3939_v31  ;;  %v3986_v52 = vld [vmem:[#allocation11 + $0x64c] ss:$16 sps:$4 sm:$0xff]   ;;  %v3984_v31 = vld [vmem:[#allocation11 + $0x648] ss:$16 sps:$4 sm:$0xff]  }
 0x213   :  { %2407 = vmatprep.subr.bf16.mxu1 %v3944_v53  ;;  %2901 = vmatprep.subr.bf16.mxu0 %v4028_v54  ;;  %v3989_v53 = vld [vmem:[#allocation11 + $0x66c] ss:$16 sps:$4 sm:$0xff]   ;;  %v3987_v54 = vld [vmem:[#allocation11 + $0x668] ss:$16 sps:$4 sm:$0xff]  }
 0x215   :  { %2309 = vmatmul.mubr.bf16.vlgmr.msra.gmra.mrb[12].mxu0 %v4609_v55 }
 0x216   :  { %2408 = vmatpush1.bf16.msra.mxu1 %v3942_v56  ;;  %2902 = vmatpush1.bf16.msra.mxu0 %v4026_v59  ;;  %v3992_v56 = vld [vmem:[#allocation11 + $0x68c] ss:$16 sps:$4 sm:$0xff]   ;;  %v3990_v59 = vld [vmem:[#allocation11 + $0x688] ss:$16 sps:$4 sm:$0xff]  }
 0x217   :  { %2409 = vmatprep.subr.bf16.mxu1 %v3947_v60  ;;  %2903 = vmatprep.subr.bf16.mxu0 %v4031_v61  ;;  %v3995_v60 = vld [vmem:[#allocation11 + $0x6ac] ss:$16 sps:$4 sm:$0xff]  }
 0x21a   :  { %2410 = vmatpush1.bf16.msra.mxu1 %v3945_v62  ;;  %2904 = vmatpush1.bf16.msra.mxu0 %v4029_v63 }
 0x21b   :  { %2411 = vmatprep.subr.bf16.mxu1 %v3950_v1  ;;  %2905 = vmatprep.subr.bf16.mxu0 %v4034_v2  ;;  %v3996_v1 = vld [vmem:[#allocation11 + $0x6c8] ss:$16 sps:$4 sm:$0xff]  }
 0x21e   :  { %2412 = vmatpush1.bf16.msra.mxu1 %v3948_v3  ;;  %2906 = vmatpush1.bf16.msra.mxu0 %v4032_v4  ;;  %v4001_v3 = vld [vmem:[#allocation11 + $0x6ec] ss:$16 sps:$4 sm:$0xff]   ;;  %v3999_v4 = vld [vmem:[#allocation11 + $0x6e8] ss:$16 sps:$4 sm:$0xff]  }
 0x21f   :  { %2413 = vmatprep.subr.bf16.mxu1 %v3953_v5  ;;  %2907 = vmatprep.subr.bf16.mxu0 %v4037_v11  ;;  %v4004_v5 = vld [vmem:[#allocation11 + $0x70c] ss:$16 sps:$4 sm:$0xff]   ;;  %v4002_v11 = vld [vmem:[#allocation11 + $0x708] ss:$16 sps:$4 sm:$0xff]  }
 0x222   :  { %2414 = vmatpush1.bf16.msra.mxu1 %v3951_v12  ;;  %2908 = vmatpush1.bf16.msra.mxu0 %v4035_v13  ;;  %v4007_v12 = vld [vmem:[#allocation11 + $0x72c] ss:$16 sps:$4 sm:$0xff]   ;;  %v4005_v13 = vld [vmem:[#allocation11 + $0x728] ss:$16 sps:$4 sm:$0xff]  }
 0x223   :  { %2415 = vmatprep.subr.bf16.mxu1 %v3956_v14  ;;  %2909 = vmatprep.subr.bf16.mxu0 %v4040_v0  ;;  %v4010_v14 = vld [vmem:[#allocation11 + $0x74c] ss:$16 sps:$4 sm:$0xff]  }
 0x224   :  { %v4067_v0 = vld [vmem:[#allocation13 + $0xd4] ss:$8 sps:$4 sm:$0xff]  }
 0x226   :  { %2416 = vmatpush1.bf16.msra.mxu1 %v3954_v15  ;;  %2910 = vmatpush1.bf16.msra.mxu0 %v4038_v16  ;;  %v4065_v15 = vld [vmem:[#allocation13 + $0xd0] ss:$8 sps:$4 sm:$0xff]  }
 0x227   :  { %2417 = vmatprep.subr.bf16.mxu1 %v3959_v17  ;;  %2911 = vmatprep.subr.bf16.mxu0 %v4043_v18  ;;  %v4008_v16 = vld [vmem:[#allocation11 + $0x748] ss:$16 sps:$4 sm:$0xff]   ;;  %v4013_v17 = vld [vmem:[#allocation11 + $0x76c] ss:$16 sps:$4 sm:$0xff]  }
 0x228   :  { %v4070_v18 = vld [vmem:[#allocation13 + $0xe4] ss:$8 sps:$4 sm:$0xff]  }
 0x22a   :  { %2418 = vmatpush1.bf16.msra.mxu1 %v3957_v19  ;;  %2912 = vmatpush1.bf16.msra.mxu0 %v4041_v20  ;;  %v4068_v19 = vld [vmem:[#allocation13 + $0xe0] ss:$8 sps:$4 sm:$0xff]  }
 0x22b   :  { %2419 = vmatprep.subr.bf16.mxu1 %v3962_v21  ;;  %2913 = vmatprep.subr.bf16.mxu0 %v4046_v10  ;;  %v4011_v20 = vld [vmem:[#allocation11 + $0x768] ss:$16 sps:$4 sm:$0xff]   ;;  %v4016_v21 = vld [vmem:[#allocation11 + $0x78c] ss:$16 sps:$4 sm:$0xff]  }
 0x22c   :  { %v4073_v10 = vld [vmem:[#allocation13 + $0xf4] ss:$8 sps:$4 sm:$0xff]  }
 0x22e   :  { %2420 = vmatpush1.bf16.msra.mxu1 %v3960_v22  ;;  %2914 = vmatpush1.bf16.msra.mxu0 %v4044_v23  ;;  %v4071_v22 = vld [vmem:[#allocation13 + $0xf0] ss:$8 sps:$4 sm:$0xff]  }
 0x22f   :  { %2421 = vmatprep.subr.bf16.mxu1 %v3965_v28  ;;  %2915 = vmatprep.subr.bf16.mxu0 %v4049_v24  ;;  %v4014_v23 = vld [vmem:[#allocation11 + $0x788] ss:$16 sps:$4 sm:$0xff]   ;;  %v4019_v28 = vld [vmem:[#allocation11 + $0x7ac] ss:$16 sps:$4 sm:$0xff]  }
 0x230   :  { %v4076_v24 = vld [vmem:[#allocation13 + $0x104] ss:$8 sps:$4 sm:$0xff]  }
 0x232   :  { %2422 = vmatpush1.bf16.msra.mxu1 %v3963_v37  ;;  %2916 = vmatpush1.bf16.msra.mxu0 %v4047_v25  ;;  %v4017_v37 = vld [vmem:[#allocation11 + $0x7a8] ss:$16 sps:$4 sm:$0xff]   ;;  %v4022_v25 = vld [vmem:[#allocation11 + $0x7cc] ss:$16 sps:$4 sm:$0xff]  }
 0x233   :  { %2423 = vmatprep.subr.bf16.mxu1 %v3968_v26  ;;  %2917 = vmatprep.subr.bf16.mxu0 %v4052_v29  ;;  %v4020_v26 = vld [vmem:[#allocation11 + $0x7c8] ss:$16 sps:$4 sm:$0xff]   ;;  %v4025_v29 = vld [vmem:[#allocation11 + $0x7ec] ss:$16 sps:$4 sm:$0xff]  }
 0x236   :  { %2424 = vmatpush1.bf16.msra.mxu1 %v3966_v58  ;;  %2918 = vmatpush1.bf16.msra.mxu0 %v4050_v32  ;;  %v4023_v58 = vld [vmem:[#allocation11 + $0x7e8] ss:$16 sps:$4 sm:$0xff]   ;;  %v4622_v32 = vld [vmem:[%s4663_s7] sm:$0xf] }
 0x237   :  { %2425 = vmatprep.subr.bf16.mxu1 %v3971_v33  ;;  %2919 = vmatprep.subr.bf16.mxu0 %v4055_v34  ;;  %v856_v33 = vrot.slane %v4622_v32, %v4548_v7  ;;  %v860_v34 = vrot.slane %v4622_v32, %v4556_v9 }
 0x23a   :  { %2426 = vmatpush1.bf16.msra.mxu1 %v3969_v36  ;;  %2920 = vmatpush1.bf16.msra.mxu0 %v4053_v38  ;;  %v4122_v36 = vld [vmem:[#allocation14 + $0x40] sm:$0xff]  }
 0x23b   :  { %2427 = vmatprep.subr.bf16.mxu1 %v3974_v40  ;;  %2921 = vmatprep.subr.bf16.mxu0 %v4058_v41  ;;  %v4123_v38 = vld [vmem:[#allocation14] sm:$0xff]   ;;  %v4124_v40 = vld [vmem:[#allocation14 + $0x48] sm:$0xff]  }
 0x23e   :  { %2428 = vmatpush1.bf16.msra.mxu1 %v3972_v42  ;;  %2922 = vmatpush1.bf16.msra.mxu0 %v4056_v8  ;;  %v4125_v42 = vld [vmem:[#allocation14 + $0x8] sm:$0xff]  }
 0x23f   :  { %2429 = vmatprep.subr.bf16.mxu1 %v3977_v43  ;;  %2923 = vmatprep.subr.bf16.mxu0 %v4061_v45  ;;  %v4126_v43 = vld [vmem:[#allocation14 + $0x50] sm:$0xff]  }
 0x242   :  { %2430 = vmatpush1.bf16.msra.mxu1 %v3975_v46  ;;  %2924 = vmatpush1.bf16.msra.mxu0 %v4059_v47 }
 0x243   :  { %2440 = vmatprep.subr.bf16.mxu1 %v3980_v35  ;;  %2925 = vmatprep.subr.bf16.mxu0 %v4064_v48 }
 0x245   :  { %2432 = vmatmul.mubr.bf16.vlgmr.msra.gmra.mrb[8].mxu1 %v4598_v39  ;;  %v3993_v39 = vld [vmem:[#allocation11 + $0x6a8] ss:$16 sps:$4 sm:$0xff]  }
 0x246   :  { %2441 = vmatpush1.bf16.msra.mxu1 %v3978_v49  ;;  %2472 = vmatprep.mubr.bf16.mxu1 %v4600_v44  ;;  %v3998_v44 = vld [vmem:[#allocation11 + $0x6cc] ss:$16 sps:$4 sm:$0xff]   ;;  %v2493_v49 = vld [vmem:[#allocation7] sm:$0xff] }
 0x247   :  { %2442 = vmatprep.subr.bf16.mxu1 %v3983_v57  ;;  %2926 = vmatpush1.bf16.msra.mxu0 %v4062_v50  ;;  %v4127_v50 = vld [vmem:[#allocation14 + $0x10] sm:$0xff]  }
 0x248   :  { %2927 = vmatprep.subr.bf16.mxu0 %v4067_v0  ;;  %v4089_v0 = vld [vmem:[#allocation13 + $0x150] ss:$8 sps:$4 sm:$0xff]  }
 0x24a   :  { %2443 = vmatpush1.bf16.msra.mxu1 %v3981_v51 }
 0x24b   :  { %2444 = vmatprep.subr.bf16.mxu1 %v3986_v52  ;;  %2928 = vmatpush1.bf16.msra.mxu0 %v4065_v15  ;;  %v2494_v52 = vld [vmem:[#allocation7 + $0x8] sm:$0xff]  ;;  %v4094_v15 = vld [vmem:[#allocation13 + $0x164] ss:$8 sps:$4 sm:$0xff]  }
 0x24c   :  { %2929 = vmatprep.subr.bf16.mxu0 %v4070_v18  ;;  %v4095_v18 = vld [vmem:[#allocation13 + $0x170] ss:$8 sps:$4 sm:$0xff]  }
 0x24e   :  { %2445 = vmatpush1.bf16.msra.mxu1 %v3984_v31  ;;  %v4128_v31 = vld [vmem:[#allocation14 + $0x58] sm:$0xff]  }
 0x24f   :  { %2446 = vmatprep.subr.bf16.mxu1 %v3989_v53  ;;  %2930 = vmatpush1.bf16.msra.mxu0 %v4068_v19  ;;  %v4100_v19 = vld [vmem:[#allocation13 + $0x184] ss:$8 sps:$4 sm:$0xff]  }
 0x250   :  { %2931 = vmatprep.subr.bf16.mxu0 %v4073_v10  ;;  %v4101_v10 = vld [vmem:[#allocation13 + $0x190] ss:$8 sps:$4 sm:$0xff]  }
 0x252   :  { %2447 = vmatpush1.bf16.msra.mxu1 %v3987_v54 }
 0x253   :  { %2448 = vmatprep.subr.bf16.mxu1 %v3992_v56  ;;  %2932 = vmatpush1.bf16.msra.mxu0 %v4071_v22  ;;  %v4106_v22 = vld [vmem:[#allocation13 + $0x1a4] ss:$8 sps:$4 sm:$0xff]  }
 0x254   :  { %2942 = vmatprep.subr.bf16.mxu0 %v4076_v24  ;;  %v4107_v24 = vld [vmem:[#allocation13 + $0x1b0] ss:$8 sps:$4 sm:$0xff]  }
 0x256   :  { %2449 = vmatpush1.bf16.msra.mxu1 %v3990_v59 }
 0x257   :  { %2450 = vmatprep.subr.bf16.mxu1 %v3995_v60  ;;  %v4129_v60 = vld [vmem:[#allocation14 + $0x18] sm:$0xff]  }
 0x258   :  { %v4614_v61 = vpop.f32.mrb[4].mxu1 }
 0x259   :  { %v4616_v62 = vpop.f32.mrb[5].mxu1  ;;  %v2188_v41 = vadd.f32 %v4614_v61, %v856_v33  ;;  %v4074_v61 = vld [vmem:[#allocation13 + $0x100] ss:$8 sps:$4 sm:$0xff]  }
 0x25a   :  { %2451 = vmatpush1.bf16.msra.mxu1 %v3993_v39  ;;  %v2191_v63 = vpop.f32.mrb[6].mxu1  ;;  %v4130_v39 = vld [vmem:[#allocation14 + $0x60] sm:$0xff]  }
 0x25b   :  { %v2192_v2 = vpop.f32.mrb[7].mxu1  ;;  %2452 = vmatprep.subr.bf16.mxu1 %v3998_v44  ;;  %v4079_v63 = vld [vmem:[#allocation13 + $0x114] ss:$8 sps:$4 sm:$0xff]   ;;  %v4116_v33 = vld [vmem:[#allocation13 + $0x1e0] ss:$8 sps:$4 sm:$0xff]  }
 0x25c   :  { %v4077_v2 = vld [vmem:[#allocation13 + $0x110] ss:$8 sps:$4 sm:$0xff]  }
 0x25e   :  { %2453 = vmatpush1.bf16.msra.mxu1 %v3996_v1  ;;  %v4131_v1 = vld [vmem:[#allocation14 + $0x20] sm:$0xff]  }
 0x25f   :  { %2454 = vmatprep.subr.bf16.mxu1 %v4001_v3  ;;  %v4082_v3 = vld [vmem:[#allocation13 + $0x124] ss:$8 sps:$4 sm:$0xff]  }
 0x262   :  { %2455 = vmatpush1.bf16.msra.mxu1 %v3999_v4  ;;  %v4080_v4 = vld [vmem:[#allocation13 + $0x120] ss:$8 sps:$4 sm:$0xff]  }
 0x263   :  { %2456 = vmatprep.subr.bf16.mxu1 %v4004_v5  ;;  %v4085_v5 = vld [vmem:[#allocation13 + $0x134] ss:$8 sps:$4 sm:$0xff]  }
 0x266   :  { %2457 = vmatpush1.bf16.msra.mxu1 %v4002_v11  ;;  %v4083_v11 = vld [vmem:[#allocation13 + $0x130] ss:$8 sps:$4 sm:$0xff]  }
 0x267   :  { %2458 = vmatprep.subr.bf16.mxu1 %v4007_v12  ;;  %v4088_v12 = vld [vmem:[#allocation13 + $0x144] ss:$8 sps:$4 sm:$0xff]  }
 0x26a   :  { %2459 = vmatpush1.bf16.msra.mxu1 %v4005_v13  ;;  %v4086_v13 = vld [vmem:[#allocation13 + $0x140] ss:$8 sps:$4 sm:$0xff]  }
 0x26b   :  { %2460 = vmatprep.subr.bf16.mxu1 %v4010_v14  ;;  %v4091_v14 = vld [vmem:[#allocation13 + $0x154] ss:$8 sps:$4 sm:$0xff]  }
 0x26e   :  { %2461 = vmatpush1.bf16.msra.mxu1 %v4008_v16  ;;  %v4092_v16 = vld [vmem:[#allocation13 + $0x160] ss:$8 sps:$4 sm:$0xff]  }
 0x26f   :  { %2462 = vmatprep.subr.bf16.mxu1 %v4013_v17  ;;  %v4097_v17 = vld [vmem:[#allocation13 + $0x174] ss:$8 sps:$4 sm:$0xff]  }
 0x272   :  { %2463 = vmatpush1.bf16.msra.mxu1 %v4011_v20  ;;  %v4098_v20 = vld [vmem:[#allocation13 + $0x180] ss:$8 sps:$4 sm:$0xff]  }
 0x273   :  { %2464 = vmatprep.subr.bf16.mxu1 %v4016_v21  ;;  %v4103_v21 = vld [vmem:[#allocation13 + $0x194] ss:$8 sps:$4 sm:$0xff]  }
 0x276   :  { %2465 = vmatpush1.bf16.msra.mxu1 %v4014_v23  ;;  %v4104_v23 = vld [vmem:[#allocation13 + $0x1a0] ss:$8 sps:$4 sm:$0xff]  }
 0x277   :  { %2466 = vmatprep.subr.bf16.mxu1 %v4019_v28  ;;  %v4109_v28 = vld [vmem:[#allocation13 + $0x1b4] ss:$8 sps:$4 sm:$0xff]  }
 0x27a   :  { %2467 = vmatpush1.bf16.msra.mxu1 %v4017_v37  ;;  %v4112_v37 = vld [vmem:[#allocation13 + $0x1c4] ss:$8 sps:$4 sm:$0xff]  }
 0x27b   :  { %2468 = vmatprep.subr.bf16.mxu1 %v4022_v25  ;;  %v4110_v25 = vld [vmem:[#allocation13 + $0x1c0] ss:$8 sps:$4 sm:$0xff]  }
 0x27e   :  { %2469 = vmatpush1.bf16.msra.mxu1 %v4020_v26  ;;  %v4115_v26 = vld [vmem:[#allocation13 + $0x1d4] ss:$8 sps:$4 sm:$0xff]  }
 0x27f   :  { %2470 = vmatprep.subr.bf16.mxu1 %v4025_v29  ;;  %v4113_v29 = vld [vmem:[#allocation13 + $0x1d0] ss:$8 sps:$4 sm:$0xff]  }
 0x282   :  { %2471 = vmatpush1.bf16.msra.mxu1 %v4023_v58  ;;  %v4118_v58 = vld [vmem:[#allocation13 + $0x1e4] ss:$8 sps:$4 sm:$0xff]  }
 0x283   :  { %3570 = vmatprep.subr.bf16.mxu1 %v4122_v36  ;;  %v4119_v36 = vld [vmem:[#allocation13 + $0x1f0] ss:$8 sps:$4 sm:$0xff]  }
 0x285   :  { %2473 = vmatmul.mubr.bf16.vlgmr.msra.gmra.mrb[8].mxu1 %v4609_v55  ;;  %v2190_v55 = vadd.f32 %v4616_v62, %v860_v34  ;;  %v4121_v34 = vld [vmem:[#allocation13 + $0x1f4] ss:$8 sps:$4 sm:$0xff]  }
 0x286   :  { %3571 = vmatpush3.bf16.msra.mxu1 %v4123_v38  ;;  %v864_v38 = vrot.slane %v4622_v32, %v189_v27 }
 0x287   :  { %3572 = vmatprep.subr.bf16.mxu1 %v4124_v40  ;;  %v868_v40 = vrot.slane %v4622_v32, %v193_v30  ;;  %v4132_v30 = vld [vmem:[#allocation14 + $0x68] sm:$0xff]  }
 0x288   :  { %v4133_v32 = vld [vmem:[#allocation14 + $0x28] sm:$0xff]  }
 0x28a   :  { %3573 = vmatpush3.bf16.msra.mxu1 %v4125_v42 }
 0x28b   :  { %3574 = vmatprep.subr.bf16.mxu1 %v4126_v43 }
 0x28e   :  { %3575 = vmatpush3.bf16.msra.mxu1 %v4127_v50 }
 0x28f   :  { %3576 = vmatprep.subr.bf16.mxu1 %v4128_v31  ;;  %v4135_v31 = vld [vmem:[#allocation14 + $0x30] sm:$0xff]  }
 0x292   :  { %3577 = vmatpush3.bf16.msra.mxu1 %v4129_v60 }
 0x293   :  { %3578 = vmatprep.subr.bf16.mxu1 %v4130_v39 }
 0x296   :  { %3579 = vmatpush3.bf16.msra.mxu1 %v4131_v1 }
 0x297   :  { %3580 = vmatprep.subr.bf16.mxu1 %v4132_v30 }
 0x29a   :  { %3581 = vmatpush3.bf16.msra.mxu1 %v4133_v32 }
 0x2e8   :  { %v2310_v8 = vpop.f32.mrb[12].mxu0 }
 0x2e9   :  { %v3593_v45 = vadd.f32 %v2310_v8, %v2188_v41  ;;  %v2312_v46 = vpop.f32.mrb[13].mxu0 }
 0x2ea   :  { %v3595_v47 = vadd.f32 %v2312_v46, %v2190_v55  ;;  %v2314_v35 = vpop.f32.mrb[14].mxu0  ;;  %v2495_v46 = vld [vmem:[#allocation7 + $0x10] sm:$0xff] }
 0x2eb   :  { %vm2481_vm9 = vcmp.gt.f32.partialorder %v3593_v45, 0.0  ;;  %v2485_v48 = vmul.f32 0.2, %v3593_v45  ;;  %v2315_v57 = vpop.f32.mrb[15].mxu0 }
 0x2ec   :  { %vm2482_vm10 = vcmp.gt.f32.partialorder %v3595_v47, 0.0  ;;  %v2486_v51 = vmul.f32 0.2, %v3595_v47 }
 0x2ed   :  { %v2489_v53 = vsel %vm2481_vm9, %v3593_v45, %v2485_v48  ;;  %v2496_v48 = vld [vmem:[#allocation7 + $0x18] sm:$0xff] }
 0x2ee   :  { %v2497_v54 = vmul.f32 %v2493_v49, %v2489_v53  ;;  %v2490_v56 = vsel %vm2482_vm10, %v3595_v47, %v2486_v51  ;;  %v4136_v53 = vld [vmem:[#allocation14 + $0x78] sm:$0xff]  }
 0x2ef   :  { %v2498_v59 = vmul.f32 %v2494_v52, %v2490_v56  ;;  %v4134_v52 = vld [vmem:[#allocation14 + $0x70] sm:$0xff]   ;;  %v2569_v56 = vld [vmem:[%s4665_s9] sm:$0x3] }
 0x2f0   :  { %v2501_v62 = vpack.c.bf16 %v2497_v54, %v2497_v54  ;;  %3582 = vmatprep.subr.bf16.mxu1 %v4134_v52  ;;  %v4137_v54 = vld [vmem:[#allocation14 + $0x38] sm:$0xff]   ;;  %v2578_v60 = vrot.slane %v2569_v56, %v4556_v9 }
 0x2f1   :  { %v2502_v44 = vpack.c.bf16 %v2498_v59, %v2498_v59  ;;  %3583 = vmatpush3.bf16.msra.mxu1 %v4135_v31  ;;  %v2574_v59 = vrot.slane %v2569_v56, %v4548_v7 }
 0x2f2   :  { %3584 = vmatprep.subr.bf16.mxu1 %v4136_v53 }
 0x2f3   :  { %2933 = vmatprep.mubr.bf16.mxu0 %v2502_v44 }
 0x2f4   :  { %2934 = vmatmul.mubr.bf16.vlgmr.msra.gmra.mrb[16].mxu0 %v2501_v62 }
 0x2f5   :  { %2943 = vmatpush1.bf16.msra.mxu0 %v4074_v61  ;;  %3585 = vmatpush3.bf16.msra.mxu1 %v4137_v54 }
 0x2f6   :  { %2944 = vmatprep.subr.bf16.mxu0 %v4079_v63 }
 0x2f9   :  { %2945 = vmatpush1.bf16.msra.mxu0 %v4077_v2  ;;  %v2989_v2 = vld [vmem:[#allocation8] sm:$0xff] }
 0x2fa   :  { %2946 = vmatprep.subr.bf16.mxu0 %v4082_v3 }
 0x2fd   :  { %2947 = vmatpush1.bf16.msra.mxu0 %v4080_v4 }
 0x2fe   :  { %2948 = vmatprep.subr.bf16.mxu0 %v4085_v5  ;;  %v2990_v5 = vld [vmem:[#allocation8 + $0x8] sm:$0xff] }
 0x301   :  { %2949 = vmatpush1.bf16.msra.mxu0 %v4083_v11 }
 0x302   :  { %2950 = vmatprep.subr.bf16.mxu0 %v4088_v12 }
 0x305   :  { %2951 = vmatpush1.bf16.msra.mxu0 %v4086_v13 }
 0x306   :  { %2952 = vmatprep.subr.bf16.mxu0 %v4091_v14 }
 0x309   :  { %2953 = vmatpush1.bf16.msra.mxu0 %v4089_v0 }
 0x30a   :  { %2954 = vmatprep.subr.bf16.mxu0 %v4094_v15  ;;  %v3552_v15 = vld [vmem:[%s4667_s11] ss:$0 sm:$0xff] }
 0x30d   :  { %2955 = vmatpush1.bf16.msra.mxu0 %v4092_v16 }
 0x30e   :  { %2956 = vmatprep.subr.bf16.mxu0 %v4097_v17 }
 0x311   :  { %2957 = vmatpush1.bf16.msra.mxu0 %v4095_v18 }
 0x312   :  { %2958 = vmatprep.subr.bf16.mxu0 %v4100_v19 }
 0x315   :  { %2959 = vmatpush1.bf16.msra.mxu0 %v4098_v20 }
 0x316   :  { %2960 = vmatprep.subr.bf16.mxu0 %v4103_v21 }
 0x319   :  { %2961 = vmatpush1.bf16.msra.mxu0 %v4101_v10 }
 0x31a   :  { %2962 = vmatprep.subr.bf16.mxu0 %v4106_v22 }
 0x31d   :  { %2963 = vmatpush1.bf16.msra.mxu0 %v4104_v23 }
 0x31e   :  { %2964 = vmatprep.subr.bf16.mxu0 %v4109_v28 }
 0x321   :  { %2965 = vmatpush1.bf16.msra.mxu0 %v4107_v24 }
 0x322   :  { %2966 = vmatprep.subr.bf16.mxu0 %v4112_v37 }
 0x325   :  { %2967 = vmatpush1.bf16.msra.mxu0 %v4110_v25 }
 0x326   :  { %2968 = vmatprep.subr.bf16.mxu0 %v4115_v26 }
 0x329   :  { %2969 = vmatpush1.bf16.msra.mxu0 %v4113_v29 }
 0x32a   :  { %2970 = vmatprep.subr.bf16.mxu0 %v4118_v58 }
 0x32d   :  { %2971 = vmatpush1.bf16.msra.mxu0 %v4116_v33 }
 0x32e   :  { %2972 = vmatprep.subr.bf16.mxu0 %v4121_v34 }
 0x331   :  { %2973 = vmatpush1.bf16.msra.mxu0 %v4119_v36 }
 0x358   :  { %v2474_v41 = vpop.f32.mrb[8].mxu1 }
 0x359   :  { %v3596_v42 = vadd.f32 %v2474_v41, %v864_v38  ;;  %v2476_v55 = vpop.f32.mrb[9].mxu1 }
 0x35a   :  { %v3597_v8 = vadd.f32 %v2476_v55, %v868_v40  ;;  %v2478_v43 = vpop.f32.mrb[10].mxu1 }
 0x35b   :  { %vm2483_vm11 = vcmp.gt.f32.partialorder %v3596_v42, 0.0  ;;  %v2487_v45 = vmul.f32 0.2, %v3596_v42  ;;  %v2479_v47 = vpop.f32.mrb[11].mxu1 }
 0x35c   :  { %vm2484_vm12 = vcmp.gt.f32.partialorder %v3597_v8, 0.0  ;;  %v2488_v35 = vmul.f32 0.2, %v3597_v8 }
 0x35d   :  { %v2491_v49 = vsel %vm2483_vm11, %v3596_v42, %v2487_v45 }
 0x35e   :  { %v2499_v57 = vmul.f32 %v2495_v46, %v2491_v49  ;;  %v2492_v50 = vsel %vm2484_vm12, %v3597_v8, %v2488_v35 }
 0x35f   :  { %v2500_v27 = vmul.f32 %v2496_v48, %v2492_v50 }
 0x360   :  { %v2503_v6 = vpack.c.bf16 %v2499_v57, %v2499_v57 }
 0x361   :  { %v2504_v51 = vpack.c.bf16 %v2500_v27, %v2500_v27 }
 0x363   :  { %2974 = vmatprep.mubr.bf16.mxu0 %v2504_v51 }
 0x364   :  { %2975 = vmatmul.mubr.bf16.vlgmr.msra.gmra.mrb[16].mxu0 %v2503_v6 }
 0x437   :  { %v2976_v39 = vpop.f32.mrb[16].mxu0 }
 0x438   :  { %v3598_v44 = vadd.f32 %v2976_v39, %v2574_v59  ;;  %v2978_v61 = vpop.f32.mrb[17].mxu0 }
 0x439   :  { %v3599_v62 = vadd.f32 %v2978_v61, %v2578_v60  ;;  %v2980_v63 = vpop.f32.mrb[18].mxu0 }
 0x43a   :  { %vm2983_vm13 = vcmp.gt.f32.partialorder %v3598_v44, 0.0  ;;  %v2985_v1 = vmul.f32 0.2, %v3598_v44  ;;  %v2981_v3 = vpop.f32.mrb[19].mxu0 }
 0x43b   :  { %vm2984_vm14 = vcmp.gt.f32.partialorder %v3599_v62, 0.0  ;;  %v2986_v4 = vmul.f32 0.2, %v3599_v62 }
 0x43c   :  { %v2987_v11 = vsel %vm2983_vm13, %v3598_v44, %v2985_v1 }
 0x43d   :  { %v2991_v12 = vmul.f32 %v2989_v2, %v2987_v11  ;;  %v2988_v13 = vsel %vm2984_vm14, %v3599_v62, %v2986_v4 }
 0x43e   :  { %v2992_v14 = vmul.f32 %v2990_v5, %v2988_v13 }
 0x43f   :  { %v2993_v7 = vpack.c.bf16 %v2991_v12, %v2991_v12 }
 0x440   :  { %v2994_v0 = vpack.c.bf16 %v2992_v14, %v2992_v14 }
 0x442   :  { %3162 = vmatprep.mubr.bf16.mxu1 %v2994_v0 }
 0x443   :  { %3163 = vmatmul.mubr.bf16.vlgmr.msra.gmra.mrb[12].mxu1 %v2993_v7 }
 0x516   :  { %v3586_v9 = vpop.f32.mrb[12].mxu1 }
 0x517   :  { %v3587_v16 = vpop.f32.mrb[13].mxu1 }
 0x518   :  { %v3588_v17 = vadd.f32 %v3587_v16, %v3586_v9  ;;  %v3589_v18 = vpop.f32.mrb[14].mxu1 }
 0x519   :  { %v3590_v19 = vpop.f32.mrb[15].mxu1 }
 0x51a   :  { %v3165_v20 = vadd.f32 %v3588_v17, %v3552_v15 }
 0x51c   :  { %v3569_v21 = vmul.f32 -1.442695, %v3165_v20 }
 0x51e   :  { %4138 = vpow2.f32 %v3569_v21 }
 0x528   :  { %v4139_v10 = vpop.eup %4138 }
 0x529   :  { %v3173_v22 = vadd.f32 1.0, %v4139_v10 }
 0x52b   :  { %4140 = vrcp.f32 %v3173_v22 }
 0x535   :  { %v4141_v23 = vpop.eup %4140 }
 0x536   :  { %3176 = vst [vmem:[#allocation16] sm:$0xff] %v4141_v23 }
 0x537   :  { %4329 = shalt.err (!%p4326_p12)
}
 0x538   :  { %s4330_s1 = scalar_lea.hbm %s4668_s12, 128 }
 0x539   :  { %p4331_p13 = scmp.ne.s32.totalorder %s4668_s12, %s4330_s1  ;;  %p4334_p0 = scmp.lt.u32.totalorder %s4330_s1, %s4668_s12 }
 0x53b   :  { %p4336_p1 = pnand %p4334_p0, %p4331_p13 }
 0x53d   :  { %4339 = shalt.err (!%p4336_p1)
}
 0x53e   :  { %3186 = dma.vmem_to_hbm [thread:$0]  %s3184_s23, 128, %s4668_s12, [#allocation4]  }
 0x53f   :  { %4350 = dma.done.wait [#allocation4], 128  }
 0x540   :  { %4351 = vsyncadd [#allocation4], 4294967168 }
 0x541   :  { %3190 = vsyncpa [#allocation3], 1 }
 0x542   :  { %3191 = vsyncpa [#allocation6], 1 }
 0x543   :  { %3192 = vsyncpa [#allocation9], 1 }
 0x544   :  { %3193 = vsyncpa [#allocation12], 1 }
 0x545   :  { %3194 = vsyncpa [#allocation15], 1 }
 0x546   :  { %3195 = vsyncpa [#allocation4], 1 }

</bundles_post_ra>
